<compile_context>
chip_gen: v5e
topology: v5e:2x2
jax: 0.10.0
libtpu: 0.0.40
codegen_flags: <defaults>
</compile_context>

<pallas_src>
import math
import jax
import jax.numpy as jnp
from jax.experimental import pallas as pl
from jax.experimental.pallas import tpu as pltpu

FEATURE_SIZE = 3          # ['consumption_daily_normalized', 'is_holiday_or_weekend', 'saison']
D_MODEL = 64
NHEAD = 4
HEAD_DIM = D_MODEL // NHEAD
NUM_LAYERS = 2
DIM_FF = 128
FORECAST_HORIZON = 7
HEAD_PAD = 128            # forecast head padded to a full 128-lane register (unmasked vst)
EPS = 1e-5


def _layer_norm(x, w, b):
    mu = jnp.mean(x, axis=-1, keepdims=True)
    xc = x - mu
    var = jnp.mean(xc * xc, axis=-1, keepdims=True)
    return xc * jax.lax.rsqrt(var + EPS) * w + b


def transformer_kernel(src_ref, win_ref, bin_ref, pe_ref,
                       qkv_w_ref, qkv_b_ref, out_w_ref, out_b_ref,
                       ff1_w_ref, ff1_b_ref, ff2_w_ref, ff2_b_ref,
                       n1_w_ref, n1_b_ref, n2_w_ref, n2_b_ref,
                       head_w_ref, head_b_ref, o_ref):
    bt, seq, _ = src_ref.shape
    m = bt * seq

    # ---- input Linear (K=3 contraction -> 3 VPU multiply-adds) + positional encoding ----
    src = src_ref[...]                                   # (bt, seq, 3) f32
    w_in = win_ref[...]                                  # (3, 64) f32
    x3 = bin_ref[...] + pe_ref[...]                      # (seq, 64); broadcasts over bt
    for f in range(FEATURE_SIZE):                        # static unroll
        x3 = x3 + src[:, :, f:f + 1] * w_in[f:f + 1, :]
    # (bt, seq, 64) -> (m, 64); free when seq % 8 == 0 (second-to-last dim 8-aligned)
    x = x3.reshape(m, D_MODEL)                           # residual stream kept in f32

    for layer in range(NUM_LAYERS):                      # static unroll (2 layers)
        last = layer == NUM_LAYERS - 1

        # --- multi-head self-attention (post-norm; dropout = identity in eval) ---
        # 1/sqrt(HEAD_DIM) is already folded into the Q rows of qkv_w / qkv_b at init.
        qkv = (jnp.dot(x.astype(jnp.bfloat16), qkv_w_ref[layer],
                       preferred_element_type=jnp.float32)
               + qkv_b_ref[layer:layer + 1, :])                          # (m, 192)
        q = qkv[:, 0:D_MODEL].reshape(bt, seq, D_MODEL)
        k = qkv[:, D_MODEL:2 * D_MODEL].reshape(bt, seq, D_MODEL)
        v = qkv[:, 2 * D_MODEL:3 * D_MODEL].reshape(bt, seq, D_MODEL)

        # Static loop over 4 heads; each contraction batched over the batch tile.
        heads = []
        for hh in range(NHEAD):
            lo = hh * HEAD_DIM
            qh = q[:, :, lo:lo + HEAD_DIM].astype(jnp.bfloat16)
            kh = k[:, :, lo:lo + HEAD_DIM].astype(jnp.bfloat16)
            vh = v[:, :, lo:lo + HEAD_DIM].astype(jnp.bfloat16)
            s = jnp.einsum("bqd,bkd->bqk", qh, kh,
                           preferred_element_type=jnp.float32)           # (bt, S, S)
            s = s - jnp.max(s, axis=-1, keepdims=True)
            p = jnp.exp(s)
            p = p * pl.reciprocal(jnp.sum(p, axis=-1, keepdims=True), approx=True)
            heads.append(jnp.einsum("bqk,bkd->bqd", p.astype(jnp.bfloat16), vh,
                                    preferred_element_type=jnp.float32))
        attn = jnp.concatenate(heads, axis=-1)                           # (bt, seq, 64)

        if not last:
            attn = attn.reshape(m, D_MODEL)
            res = x
        else:
            # Only the last timestep feeds the forecasting head: drop the dead rows
            # before out-projection / LayerNorm / FFN of the final layer.
            attn = attn[:, seq - 1:seq, :].reshape(bt, D_MODEL)
            res = x.reshape(bt, seq, D_MODEL)[:, seq - 1:seq, :].reshape(bt, D_MODEL)

        attn = (jnp.dot(attn.astype(jnp.bfloat16), out_w_ref[layer],
                        preferred_element_type=jnp.float32)
                + out_b_ref[layer:layer + 1, :])
        x = _layer_norm(res + attn,
                        n1_w_ref[layer:layer + 1, :], n1_b_ref[layer:layer + 1, :])

        # --- feed-forward (Linear -> ReLU -> Linear) ---
        h1 = (jnp.dot(x.astype(jnp.bfloat16), ff1_w_ref[layer],
                      preferred_element_type=jnp.float32)
              + ff1_b_ref[layer:layer + 1, :])
        h1 = jnp.maximum(h1, 0.0)
        h2 = (jnp.dot(h1.astype(jnp.bfloat16), ff2_w_ref[layer],
                      preferred_element_type=jnp.float32)
              + ff2_b_ref[layer:layer + 1, :])
        x = _layer_norm(x + h2,
                        n2_w_ref[layer:layer + 1, :], n2_b_ref[layer:layer + 1, :])

    # --- forecasting head on the (bt, 64) last-timestep activation (lane-padded to 128) ---
    o_ref[...] = (jnp.dot(x.astype(jnp.bfloat16), head_w_ref[...],
                          preferred_element_type=jnp.float32)
                  + head_b_ref[...])


def time_series_transformer(src, params):
    batch, seq, feat = src.shape
    assert feat == FEATURE_SIZE
    pe_full = params["pe"]
    assert seq <= pe_full.shape[0], "sequence length exceeds positional-encoding table"
    pe = pe_full[:seq]

    # Batch tiling: target ~2048 flattened rows (M = b_tile * seq) per grid step to
    # amortize the ~0.35 us fixed per-step pipeline overhead and fill the MXU M dim.
    if batch <= 8:
        b_tile = batch                                   # tiny batch: single grid step
    else:
        b_tile = max(8, ((2048 // seq) // 8) * 8)
        # Keep at least 2 grid steps for large batches: the "parallel" grid axis is the
        # only way this kernel uses both v7x TensorCores.
        half = ((pl.cdiv(batch, 2) + 7) // 8) * 8
        b_tile = min(b_tile, half)
    grid_b = pl.cdiv(batch, b_tile)
    batch_pad = grid_b * b_tile
    if batch_pad != batch:
        src = jnp.pad(src, ((0, batch_pad - batch), (0, 0), (0, 0)))

    consts = [
        params["win_t"], params["bin"], pe,
        params["qkv_wt"], params["qkv_b"], params["out_wt"], params["out_b"],
        params["ff1_wt"], params["ff1_b"], params["ff2_wt"], params["ff2_b"],
        params["n1_w"], params["n1_b"], params["n2_w"], params["n2_b"],
        params["head_wt"], params["head_b"],
    ]
    # Constant across grid steps -> whole-array VMEM operands (single-buffered, no
    # per-step pipelining / double-buffer VMEM waste).
    const_spec = pl.BlockSpec(memory_space=pltpu.MemorySpace.VMEM)

    out = pl.pallas_call(
        transformer_kernel,
        out_shape=jax.ShapeDtypeStruct((batch_pad, HEAD_PAD), jnp.float32),
        grid=(grid_b,),
        in_specs=([pl.BlockSpec((b_tile, seq, FEATURE_SIZE), lambda b: (b, 0, 0))]
                  + [const_spec] * len(consts)),
        out_specs=pl.BlockSpec((b_tile, HEAD_PAD), lambda b: (b, 0)),
        compiler_params=pltpu.CompilerParams(
            dimension_semantics=("parallel",),
            # raise v5e's 16 MiB scoped default; stay well under v7x's 64 MiB physical
            vmem_limit_bytes=48 * 1024 * 1024),
    )(src, *consts)
    return out[:batch, :FORECAST_HORIZON]


def positional_encoding(max_len, d_model):
    position = jnp.arange(max_len, dtype=jnp.float32)[:, None]
    div_term = jnp.exp(jnp.arange(0, d_model, 2, dtype=jnp.float32)
                       * (-math.log(10000.0) / d_model))
    ang = position * div_term
    pe = jnp.zeros((max_len, d_model), jnp.float32)
    pe = pe.at[:, 0::2].set(jnp.sin(ang))
    pe = pe.at[:, 1::2].set(jnp.cos(ang))
    return pe


def init_params(key, max_len):
    ks = iter(jax.random.split(key, 32))

    def linear(out_dim, in_dim):
        bound = 1.0 / math.sqrt(in_dim)
        w = jax.random.uniform(next(ks), (out_dim, in_dim), jnp.float32, -bound, bound)
        b = jax.random.uniform(next(ks), (out_dim,), jnp.float32, -bound, bound)
        return w, b

    # input / head projections
    w_in, b_in = linear(D_MODEL, FEATURE_SIZE)
    w_head, b_head = linear(FORECAST_HORIZON, D_MODEL)

    scale = 1.0 / math.sqrt(HEAD_DIM)
    qkv_wt, qkv_b, out_wt, out_b = [], [], [], []
    ff1_wt, ff1_b, ff2_wt, ff2_b = [], [], [], []
    for _ in range(NUM_LAYERS):
        w_qkv, b_qkv = linear(3 * D_MODEL, D_MODEL)
        # Fold the 1/sqrt(head_dim) attention scale into the Q rows (weight + bias).
        w_qkv = w_qkv.at[:D_MODEL, :].multiply(scale)
        b_qkv = b_qkv.at[:D_MODEL].multiply(scale)
        w_o, b_o = linear(D_MODEL, D_MODEL)
        w_f1, b_f1 = linear(DIM_FF, D_MODEL)
        w_f2, b_f2 = linear(D_MODEL, DIM_FF)
        qkv_wt.append(w_qkv.T); qkv_b.append(b_qkv)
        out_wt.append(w_o.T);   out_b.append(b_o)
        ff1_wt.append(w_f1.T);  ff1_b.append(b_f1)
        ff2_wt.append(w_f2.T);  ff2_b.append(b_f2)

    # forecast head padded to 128 output lanes (unmasked stores); sliced in wrapper
    head_wt = jnp.zeros((D_MODEL, HEAD_PAD), jnp.float32).at[:, :FORECAST_HORIZON].set(w_head.T)
    head_b = jnp.zeros((1, HEAD_PAD), jnp.float32).at[0, :FORECAST_HORIZON].set(b_head)

    bf16 = jnp.bfloat16
    return {
        "pe": positional_encoding(max_len, D_MODEL),     # (max_len, 64) f32
        "win_t": w_in.T,                                 # (3, 64) f32 (VPU in-kernel projection)
        "bin": b_in[None, :],                            # (1, 64) f32
        # matmul weights in bf16 (f32 accumulation in-kernel); biases / LN params in f32
        "qkv_wt": jnp.stack(qkv_wt).astype(bf16), "qkv_b": jnp.stack(qkv_b),   # (L,64,192),(L,192)
        "out_wt": jnp.stack(out_wt).astype(bf16), "out_b": jnp.stack(out_b),   # (L,64,64), (L,64)
        "ff1_wt": jnp.stack(ff1_wt).astype(bf16), "ff1_b": jnp.stack(ff1_b),   # (L,64,128),(L,128)
        "ff2_wt": jnp.stack(ff2_wt).astype(bf16), "ff2_b": jnp.stack(ff2_b),   # (L,128,64),(L,64)
        "n1_w": jnp.ones((NUM_LAYERS, D_MODEL), jnp.float32),   # PyTorch LayerNorm default init
        "n1_b": jnp.zeros((NUM_LAYERS, D_MODEL), jnp.float32),
        "n2_w": jnp.ones((NUM_LAYERS, D_MODEL), jnp.float32),
        "n2_b": jnp.zeros((NUM_LAYERS, D_MODEL), jnp.float32),
        "head_wt": head_wt.astype(bf16),                 # (64, 128) bf16, zero-padded
        "head_b": head_b,                                # (1, 128)  f32, zero-padded
    }


if __name__ == "__main__":
    key = jax.random.PRNGKey(0)
    k_src, k_par = jax.random.split(key)
    batch, seq = 2, 8
    src = jax.random.normal(k_src, (batch, seq, FEATURE_SIZE), jnp.float32)
    params = init_params(k_par, max_len=seq)

    pred = time_series_transformer(src, params)
    jax.block_until_ready(pred)
    assert pred.shape == (batch, FORECAST_HORIZON)
    assert bool(jnp.all(jnp.isfinite(pred)))
    print("KERNEL_OK")
</pallas_src>

<mosaic_0001>
module attributes {stable_mosaic.version = 11 : i64} {
  func.func @transformer_kernel(%arg0: i32, %arg1: memref<2x8x3xf32, #tpu.memory_space<vmem>>, %arg2: memref<3x64xf32, #tpu.memory_space<vmem>>, %arg3: memref<1x64xf32, #tpu.memory_space<vmem>>, %arg4: memref<8x64xf32, #tpu.memory_space<vmem>>, %arg5: memref<2x64x192xbf16, #tpu.memory_space<vmem>>, %arg6: memref<2x192xf32, #tpu.memory_space<vmem>>, %arg7: memref<2x64x64xbf16, #tpu.memory_space<vmem>>, %arg8: memref<2x64xf32, #tpu.memory_space<vmem>>, %arg9: memref<2x64x128xbf16, #tpu.memory_space<vmem>>, %arg10: memref<2x128xf32, #tpu.memory_space<vmem>>, %arg11: memref<2x128x64xbf16, #tpu.memory_space<vmem>>, %arg12: memref<2x64xf32, #tpu.memory_space<vmem>>, %arg13: memref<2x64xf32, #tpu.memory_space<vmem>>, %arg14: memref<2x64xf32, #tpu.memory_space<vmem>>, %arg15: memref<2x64xf32, #tpu.memory_space<vmem>>, %arg16: memref<2x64xf32, #tpu.memory_space<vmem>>, %arg17: memref<64x128xbf16, #tpu.memory_space<vmem>>, %arg18: memref<1x128xf32, #tpu.memory_space<vmem>>, %arg19: memref<2x128xf32, #tpu.memory_space<vmem>>) attributes {dimension_semantics = [#tpu.dimension_semantics<parallel>], iteration_bounds = array<i64: 1>, scalar_prefetch = 0 : i64, scratch_operands = 0 : i64, tpu.core_type = #tpu.core_type<tc>, window_params = [{transform_indices = @transform_0, window_bounds = array<i64: 2, 8, 3>}, {pipeline_mode = #tpu.pipeline_mode<synchronous>, transform_indices = @transform_1, window_bounds = array<i64: 3, 64>}, {pipeline_mode = #tpu.pipeline_mode<synchronous>, transform_indices = @transform_2, window_bounds = array<i64: 1, 64>}, {pipeline_mode = #tpu.pipeline_mode<synchronous>, transform_indices = @transform_3, window_bounds = array<i64: 8, 64>}, {pipeline_mode = #tpu.pipeline_mode<synchronous>, transform_indices = @transform_4, window_bounds = array<i64: 2, 64, 192>}, {pipeline_mode = #tpu.pipeline_mode<synchronous>, transform_indices = @transform_5, window_bounds = array<i64: 2, 192>}, {pipeline_mode = #tpu.pipeline_mode<synchronous>, transform_indices = @transform_6, window_bounds = array<i64: 2, 64, 64>}, {pipeline_mode = #tpu.pipeline_mode<synchronous>, transform_indices = @transform_7, window_bounds = array<i64: 2, 64>}, {pipeline_mode = #tpu.pipeline_mode<synchronous>, transform_indices = @transform_8, window_bounds = array<i64: 2, 64, 128>}, {pipeline_mode = #tpu.pipeline_mode<synchronous>, transform_indices = @transform_9, window_bounds = array<i64: 2, 128>}, {pipeline_mode = #tpu.pipeline_mode<synchronous>, transform_indices = @transform_10, window_bounds = array<i64: 2, 128, 64>}, {pipeline_mode = #tpu.pipeline_mode<synchronous>, transform_indices = @transform_11, window_bounds = array<i64: 2, 64>}, {pipeline_mode = #tpu.pipeline_mode<synchronous>, transform_indices = @transform_12, window_bounds = array<i64: 2, 64>}, {pipeline_mode = #tpu.pipeline_mode<synchronous>, transform_indices = @transform_13, window_bounds = array<i64: 2, 64>}, {pipeline_mode = #tpu.pipeline_mode<synchronous>, transform_indices = @transform_14, window_bounds = array<i64: 2, 64>}, {pipeline_mode = #tpu.pipeline_mode<synchronous>, transform_indices = @transform_15, window_bounds = array<i64: 2, 64>}, {pipeline_mode = #tpu.pipeline_mode<synchronous>, transform_indices = @transform_16, window_bounds = array<i64: 64, 128>}, {pipeline_mode = #tpu.pipeline_mode<synchronous>, transform_indices = @transform_17, window_bounds = array<i64: 1, 128>}, {transform_indices = @transform_18, window_bounds = array<i64: 2, 128>}]} {
    %c0 = arith.constant 0 : index
    %c0_0 = arith.constant 0 : index
    %c0_1 = arith.constant 0 : index
    %0 = vector.load %arg1[%c0, %c0_0, %c0_1] : memref<2x8x3xf32, #tpu.memory_space<vmem>>, vector<2x8x3xf32>
    %c0_2 = arith.constant 0 : index
    %c0_3 = arith.constant 0 : index
    %1 = vector.load %arg2[%c0_2, %c0_3] : memref<3x64xf32, #tpu.memory_space<vmem>>, vector<3x64xf32>
    %c0_4 = arith.constant 0 : index
    %c0_5 = arith.constant 0 : index
    %2 = vector.load %arg3[%c0_4, %c0_5] : memref<1x64xf32, #tpu.memory_space<vmem>>, vector<1x64xf32>
    %c0_6 = arith.constant 0 : index
    %c0_7 = arith.constant 0 : index
    %3 = vector.load %arg4[%c0_6, %c0_7] : memref<8x64xf32, #tpu.memory_space<vmem>>, vector<8x64xf32>
    %4 = vector.broadcast %2 : vector<1x64xf32> to vector<8x64xf32>
    %5 = arith.addf %4, %3 : vector<8x64xf32>
    %6 = vector.extract_strided_slice %0 {offsets = [0, 0, 0], sizes = [2, 8, 1], strides = [1, 1, 1]} : vector<2x8x3xf32> to vector<2x8x1xf32>
    %7 = vector.extract_strided_slice %1 {offsets = [0, 0], sizes = [1, 64], strides = [1, 1]} : vector<3x64xf32> to vector<1x64xf32>
    %8 = vector.shape_cast %7 : vector<1x64xf32> to vector<1x1x64xf32>
    %9 = vector.broadcast %6 : vector<2x8x1xf32> to vector<2x8x64xf32>
    %10 = vector.broadcast %8 : vector<1x1x64xf32> to vector<2x8x64xf32>
    %11 = arith.mulf %9, %10 : vector<2x8x64xf32>
    %12 = vector.shape_cast %5 : vector<8x64xf32> to vector<1x8x64xf32>
    %13 = vector.broadcast %12 : vector<1x8x64xf32> to vector<2x8x64xf32>
    %14 = arith.addf %13, %11 : vector<2x8x64xf32>
    %15 = vector.extract_strided_slice %0 {offsets = [0, 0, 1], sizes = [2, 8, 1], strides = [1, 1, 1]} : vector<2x8x3xf32> to vector<2x8x1xf32>
    %16 = vector.extract_strided_slice %1 {offsets = [1, 0], sizes = [1, 64], strides = [1, 1]} : vector<3x64xf32> to vector<1x64xf32>
    %17 = vector.shape_cast %16 : vector<1x64xf32> to vector<1x1x64xf32>
    %18 = vector.broadcast %15 : vector<2x8x1xf32> to vector<2x8x64xf32>
    %19 = vector.broadcast %17 : vector<1x1x64xf32> to vector<2x8x64xf32>
    %20 = arith.mulf %18, %19 : vector<2x8x64xf32>
    %21 = arith.addf %14, %20 : vector<2x8x64xf32>
    %22 = vector.extract_strided_slice %0 {offsets = [0, 0, 2], sizes = [2, 8, 1], strides = [1, 1, 1]} : vector<2x8x3xf32> to vector<2x8x1xf32>
    %23 = vector.extract_strided_slice %1 {offsets = [2, 0], sizes = [1, 64], strides = [1, 1]} : vector<3x64xf32> to vector<1x64xf32>
    %24 = vector.shape_cast %23 : vector<1x64xf32> to vector<1x1x64xf32>
    %25 = vector.broadcast %22 : vector<2x8x1xf32> to vector<2x8x64xf32>
    %26 = vector.broadcast %24 : vector<1x1x64xf32> to vector<2x8x64xf32>
    %27 = arith.mulf %25, %26 : vector<2x8x64xf32>
    %28 = arith.addf %21, %27 : vector<2x8x64xf32>
    %29 = vector.shape_cast %28 : vector<2x8x64xf32> to vector<16x64xf32>
    %30 = arith.truncf %29 : vector<16x64xf32> to vector<16x64xbf16>
    %c0_8 = arith.constant 0 : index
    %c0_9 = arith.constant 0 : index
    %c0_10 = arith.constant 0 : index
    %31 = vector.load %arg5[%c0_8, %c0_9, %c0_10] : memref<2x64x192xbf16, #tpu.memory_space<vmem>>, vector<1x64x192xbf16>
    %32 = vector.shape_cast %31 : vector<1x64x192xbf16> to vector<64x192xbf16>
    %cst = arith.constant dense<0.000000e+00> : vector<16x192xf32>
    %33 = tpu.matmul %30, %32, %cst {dimension_numbers = #tpu.dot_dimension_numbers<[1], [0], [0], [1], [0, 0, 1, 1], [], []>} : vector<16x64xbf16>, vector<64x192xbf16>, vector<16x192xf32> -> vector<16x192xf32>
    %c0_11 = arith.constant 0 : index
    %c0_12 = arith.constant 0 : index
    %34 = vector.load %arg6[%c0_11, %c0_12] : memref<2x192xf32, #tpu.memory_space<vmem>>, vector<1x192xf32>
    %35 = vector.broadcast %34 : vector<1x192xf32> to vector<16x192xf32>
    %36 = arith.addf %33, %35 : vector<16x192xf32>
    %37 = vector.extract_strided_slice %36 {offsets = [0, 0], sizes = [16, 64], strides = [1, 1]} : vector<16x192xf32> to vector<16x64xf32>
    %38 = vector.shape_cast %37 : vector<16x64xf32> to vector<2x8x64xf32>
    %39 = vector.extract_strided_slice %36 {offsets = [0, 64], sizes = [16, 64], strides = [1, 1]} : vector<16x192xf32> to vector<16x64xf32>
    %40 = vector.shape_cast %39 : vector<16x64xf32> to vector<2x8x64xf32>
    %41 = vector.extract_strided_slice %36 {offsets = [0, 128], sizes = [16, 64], strides = [1, 1]} : vector<16x192xf32> to vector<16x64xf32>
    %42 = vector.shape_cast %41 : vector<16x64xf32> to vector<2x8x64xf32>
    %43 = vector.extract_strided_slice %38 {offsets = [0, 0, 0], sizes = [2, 8, 16], strides = [1, 1, 1]} : vector<2x8x64xf32> to vector<2x8x16xf32>
    %44 = arith.truncf %43 : vector<2x8x16xf32> to vector<2x8x16xbf16>
    %45 = vector.extract_strided_slice %40 {offsets = [0, 0, 0], sizes = [2, 8, 16], strides = [1, 1, 1]} : vector<2x8x64xf32> to vector<2x8x16xf32>
    %46 = arith.truncf %45 : vector<2x8x16xf32> to vector<2x8x16xbf16>
    %47 = vector.extract_strided_slice %42 {offsets = [0, 0, 0], sizes = [2, 8, 16], strides = [1, 1, 1]} : vector<2x8x64xf32> to vector<2x8x16xf32>
    %48 = arith.truncf %47 : vector<2x8x16xf32> to vector<2x8x16xbf16>
    "tpu.trace_start"() <{level = 10 : i32, message = "bqd,bkd->bqk"}> : () -> ()
    %cst_13 = arith.constant dense<0.000000e+00> : vector<2x8x8xf32>
    %49 = tpu.matmul %44, %46, %cst_13 {dimension_numbers = #tpu.dot_dimension_numbers<[2], [2], [1], [1], [0, 0, 0, 1, 1, 1], [0], [0]>} : vector<2x8x16xbf16>, vector<2x8x16xbf16>, vector<2x8x8xf32> -> vector<2x8x8xf32>
    "tpu.trace_stop"() : () -> ()
    %cst_14 = arith.constant dense<0xFF800000> : vector<2x8xf32>
    %50 = vector.multi_reduction <maximumf>, %49, %cst_14 [2] : vector<2x8x8xf32> to vector<2x8xf32>
    %51 = vector.shape_cast %50 : vector<2x8xf32> to vector<2x8x1xf32>
    %52 = vector.broadcast %51 : vector<2x8x1xf32> to vector<2x8x8xf32>
    %53 = arith.subf %49, %52 : vector<2x8x8xf32>
    %54 = math.exp %53 : vector<2x8x8xf32>
    %cst_15 = arith.constant dense<0.000000e+00> : vector<2x8xf32>
    %55 = vector.multi_reduction <add>, %54, %cst_15 [2] : vector<2x8x8xf32> to vector<2x8xf32>
    %56 = vector.shape_cast %55 : vector<2x8xf32> to vector<2x8x1xf32>
    %57 = tpu.reciprocal %56 {approx = true} : vector<2x8x1xf32> -> vector<2x8x1xf32>
    %58 = vector.broadcast %57 : vector<2x8x1xf32> to vector<2x8x8xf32>
    %59 = arith.mulf %54, %58 : vector<2x8x8xf32>
    %60 = arith.truncf %59 : vector<2x8x8xf32> to vector<2x8x8xbf16>
    "tpu.trace_start"() <{level = 10 : i32, message = "bqk,bkd->bqd"}> : () -> ()
    %cst_16 = arith.constant dense<0.000000e+00> : vector<2x8x16xf32>
    %61 = tpu.matmul %60, %48, %cst_16 {dimension_numbers = #tpu.dot_dimension_numbers<[2], [1], [1], [2], [0, 0, 0, 1, 1, 2], [0], [0]>} : vector<2x8x8xbf16>, vector<2x8x16xbf16>, vector<2x8x16xf32> -> vector<2x8x16xf32>
    "tpu.trace_stop"() : () -> ()
    %62 = vector.extract_strided_slice %38 {offsets = [0, 0, 16], sizes = [2, 8, 16], strides = [1, 1, 1]} : vector<2x8x64xf32> to vector<2x8x16xf32>
    %63 = arith.truncf %62 : vector<2x8x16xf32> to vector<2x8x16xbf16>
    %64 = vector.extract_strided_slice %40 {offsets = [0, 0, 16], sizes = [2, 8, 16], strides = [1, 1, 1]} : vector<2x8x64xf32> to vector<2x8x16xf32>
    %65 = arith.truncf %64 : vector<2x8x16xf32> to vector<2x8x16xbf16>
    %66 = vector.extract_strided_slice %42 {offsets = [0, 0, 16], sizes = [2, 8, 16], strides = [1, 1, 1]} : vector<2x8x64xf32> to vector<2x8x16xf32>
    %67 = arith.truncf %66 : vector<2x8x16xf32> to vector<2x8x16xbf16>
    "tpu.trace_start"() <{level = 10 : i32, message = "bqd,bkd->bqk"}> : () -> ()
    %cst_17 = arith.constant dense<0.000000e+00> : vector<2x8x8xf32>
    %68 = tpu.matmul %63, %65, %cst_17 {dimension_numbers = #tpu.dot_dimension_numbers<[2], [2], [1], [1], [0, 0, 0, 1, 1, 1], [0], [0]>} : vector<2x8x16xbf16>, vector<2x8x16xbf16>, vector<2x8x8xf32> -> vector<2x8x8xf32>
    "tpu.trace_stop"() : () -> ()
    %cst_18 = arith.constant dense<0xFF800000> : vector<2x8xf32>
    %69 = vector.multi_reduction <maximumf>, %68, %cst_18 [2] : vector<2x8x8xf32> to vector<2x8xf32>
    %70 = vector.shape_cast %69 : vector<2x8xf32> to vector<2x8x1xf32>
    %71 = vector.broadcast %70 : vector<2x8x1xf32> to vector<2x8x8xf32>
    %72 = arith.subf %68, %71 : vector<2x8x8xf32>
    %73 = math.exp %72 : vector<2x8x8xf32>
    %cst_19 = arith.constant dense<0.000000e+00> : vector<2x8xf32>
    %74 = vector.multi_reduction <add>, %73, %cst_19 [2] : vector<2x8x8xf32> to vector<2x8xf32>
    %75 = vector.shape_cast %74 : vector<2x8xf32> to vector<2x8x1xf32>
    %76 = tpu.reciprocal %75 {approx = true} : vector<2x8x1xf32> -> vector<2x8x1xf32>
    %77 = vector.broadcast %76 : vector<2x8x1xf32> to vector<2x8x8xf32>
    %78 = arith.mulf %73, %77 : vector<2x8x8xf32>
    %79 = arith.truncf %78 : vector<2x8x8xf32> to vector<2x8x8xbf16>
    "tpu.trace_start"() <{level = 10 : i32, message = "bqk,bkd->bqd"}> : () -> ()
    %cst_20 = arith.constant dense<0.000000e+00> : vector<2x8x16xf32>
    %80 = tpu.matmul %79, %67, %cst_20 {dimension_numbers = #tpu.dot_dimension_numbers<[2], [1], [1], [2], [0, 0, 0, 1, 1, 2], [0], [0]>} : vector<2x8x8xbf16>, vector<2x8x16xbf16>, vector<2x8x16xf32> -> vector<2x8x16xf32>
    "tpu.trace_stop"() : () -> ()
    %81 = vector.extract_strided_slice %38 {offsets = [0, 0, 32], sizes = [2, 8, 16], strides = [1, 1, 1]} : vector<2x8x64xf32> to vector<2x8x16xf32>
    %82 = arith.truncf %81 : vector<2x8x16xf32> to vector<2x8x16xbf16>
    %83 = vector.extract_strided_slice %40 {offsets = [0, 0, 32], sizes = [2, 8, 16], strides = [1, 1, 1]} : vector<2x8x64xf32> to vector<2x8x16xf32>
    %84 = arith.truncf %83 : vector<2x8x16xf32> to vector<2x8x16xbf16>
    %85 = vector.extract_strided_slice %42 {offsets = [0, 0, 32], sizes = [2, 8, 16], strides = [1, 1, 1]} : vector<2x8x64xf32> to vector<2x8x16xf32>
    %86 = arith.truncf %85 : vector<2x8x16xf32> to vector<2x8x16xbf16>
    "tpu.trace_start"() <{level = 10 : i32, message = "bqd,bkd->bqk"}> : () -> ()
    %cst_21 = arith.constant dense<0.000000e+00> : vector<2x8x8xf32>
    %87 = tpu.matmul %82, %84, %cst_21 {dimension_numbers = #tpu.dot_dimension_numbers<[2], [2], [1], [1], [0, 0, 0, 1, 1, 1], [0], [0]>} : vector<2x8x16xbf16>, vector<2x8x16xbf16>, vector<2x8x8xf32> -> vector<2x8x8xf32>
    "tpu.trace_stop"() : () -> ()
    %cst_22 = arith.constant dense<0xFF800000> : vector<2x8xf32>
    %88 = vector.multi_reduction <maximumf>, %87, %cst_22 [2] : vector<2x8x8xf32> to vector<2x8xf32>
    %89 = vector.shape_cast %88 : vector<2x8xf32> to vector<2x8x1xf32>
    %90 = vector.broadcast %89 : vector<2x8x1xf32> to vector<2x8x8xf32>
    %91 = arith.subf %87, %90 : vector<2x8x8xf32>
    %92 = math.exp %91 : vector<2x8x8xf32>
    %cst_23 = arith.constant dense<0.000000e+00> : vector<2x8xf32>
    %93 = vector.multi_reduction <add>, %92, %cst_23 [2] : vector<2x8x8xf32> to vector<2x8xf32>
    %94 = vector.shape_cast %93 : vector<2x8xf32> to vector<2x8x1xf32>
    %95 = tpu.reciprocal %94 {approx = true} : vector<2x8x1xf32> -> vector<2x8x1xf32>
    %96 = vector.broadcast %95 : vector<2x8x1xf32> to vector<2x8x8xf32>
    %97 = arith.mulf %92, %96 : vector<2x8x8xf32>
    %98 = arith.truncf %97 : vector<2x8x8xf32> to vector<2x8x8xbf16>
    "tpu.trace_start"() <{level = 10 : i32, message = "bqk,bkd->bqd"}> : () -> ()
    %cst_24 = arith.constant dense<0.000000e+00> : vector<2x8x16xf32>
    %99 = tpu.matmul %98, %86, %cst_24 {dimension_numbers = #tpu.dot_dimension_numbers<[2], [1], [1], [2], [0, 0, 0, 1, 1, 2], [0], [0]>} : vector<2x8x8xbf16>, vector<2x8x16xbf16>, vector<2x8x16xf32> -> vector<2x8x16xf32>
    "tpu.trace_stop"() : () -> ()
    %100 = vector.extract_strided_slice %38 {offsets = [0, 0, 48], sizes = [2, 8, 16], strides = [1, 1, 1]} : vector<2x8x64xf32> to vector<2x8x16xf32>
    %101 = arith.truncf %100 : vector<2x8x16xf32> to vector<2x8x16xbf16>
    %102 = vector.extract_strided_slice %40 {offsets = [0, 0, 48], sizes = [2, 8, 16], strides = [1, 1, 1]} : vector<2x8x64xf32> to vector<2x8x16xf32>
    %103 = arith.truncf %102 : vector<2x8x16xf32> to vector<2x8x16xbf16>
    %104 = vector.extract_strided_slice %42 {offsets = [0, 0, 48], sizes = [2, 8, 16], strides = [1, 1, 1]} : vector<2x8x64xf32> to vector<2x8x16xf32>
    %105 = arith.truncf %104 : vector<2x8x16xf32> to vector<2x8x16xbf16>
    "tpu.trace_start"() <{level = 10 : i32, message = "bqd,bkd->bqk"}> : () -> ()
    %cst_25 = arith.constant dense<0.000000e+00> : vector<2x8x8xf32>
    %106 = tpu.matmul %101, %103, %cst_25 {dimension_numbers = #tpu.dot_dimension_numbers<[2], [2], [1], [1], [0, 0, 0, 1, 1, 1], [0], [0]>} : vector<2x8x16xbf16>, vector<2x8x16xbf16>, vector<2x8x8xf32> -> vector<2x8x8xf32>
    "tpu.trace_stop"() : () -> ()
    %cst_26 = arith.constant dense<0xFF800000> : vector<2x8xf32>
    %107 = vector.multi_reduction <maximumf>, %106, %cst_26 [2] : vector<2x8x8xf32> to vector<2x8xf32>
    %108 = vector.shape_cast %107 : vector<2x8xf32> to vector<2x8x1xf32>
    %109 = vector.broadcast %108 : vector<2x8x1xf32> to vector<2x8x8xf32>
    %110 = arith.subf %106, %109 : vector<2x8x8xf32>
    %111 = math.exp %110 : vector<2x8x8xf32>
    %cst_27 = arith.constant dense<0.000000e+00> : vector<2x8xf32>
    %112 = vector.multi_reduction <add>, %111, %cst_27 [2] : vector<2x8x8xf32> to vector<2x8xf32>
    %113 = vector.shape_cast %112 : vector<2x8xf32> to vector<2x8x1xf32>
    %114 = tpu.reciprocal %113 {approx = true} : vector<2x8x1xf32> -> vector<2x8x1xf32>
    %115 = vector.broadcast %114 : vector<2x8x1xf32> to vector<2x8x8xf32>
    %116 = arith.mulf %111, %115 : vector<2x8x8xf32>
    %117 = arith.truncf %116 : vector<2x8x8xf32> to vector<2x8x8xbf16>
    "tpu.trace_start"() <{level = 10 : i32, message = "bqk,bkd->bqd"}> : () -> ()
    %cst_28 = arith.constant dense<0.000000e+00> : vector<2x8x16xf32>
    %118 = tpu.matmul %117, %105, %cst_28 {dimension_numbers = #tpu.dot_dimension_numbers<[2], [1], [1], [2], [0, 0, 0, 1, 1, 2], [0], [0]>} : vector<2x8x8xbf16>, vector<2x8x16xbf16>, vector<2x8x16xf32> -> vector<2x8x16xf32>
    "tpu.trace_stop"() : () -> ()
    %119 = tpu.concatenate %61, %80, %99, %118 in 2 : vector<2x8x16xf32>, vector<2x8x16xf32>, vector<2x8x16xf32>, vector<2x8x16xf32> -> vector<2x8x64xf32>
    %120 = vector.shape_cast %119 : vector<2x8x64xf32> to vector<16x64xf32>
    %121 = arith.truncf %120 : vector<16x64xf32> to vector<16x64xbf16>
    %c0_29 = arith.constant 0 : index
    %c0_30 = arith.constant 0 : index
    %c0_31 = arith.constant 0 : index
    %122 = vector.load %arg7[%c0_29, %c0_30, %c0_31] : memref<2x64x64xbf16, #tpu.memory_space<vmem>>, vector<1x64x64xbf16>
    %123 = vector.shape_cast %122 : vector<1x64x64xbf16> to vector<64x64xbf16>
    %cst_32 = arith.constant dense<0.000000e+00> : vector<16x64xf32>
    %124 = tpu.matmul %121, %123, %cst_32 {dimension_numbers = #tpu.dot_dimension_numbers<[1], [0], [0], [1], [0, 0, 1, 1], [], []>} : vector<16x64xbf16>, vector<64x64xbf16>, vector<16x64xf32> -> vector<16x64xf32>
    %c0_33 = arith.constant 0 : index
    %c0_34 = arith.constant 0 : index
    %125 = vector.load %arg8[%c0_33, %c0_34] : memref<2x64xf32, #tpu.memory_space<vmem>>, vector<1x64xf32>
    %126 = vector.broadcast %125 : vector<1x64xf32> to vector<16x64xf32>
    %127 = arith.addf %124, %126 : vector<16x64xf32>
    %128 = arith.addf %29, %127 : vector<16x64xf32>
    %c0_35 = arith.constant 0 : index
    %c0_36 = arith.constant 0 : index
    %129 = vector.load %arg13[%c0_35, %c0_36] : memref<2x64xf32, #tpu.memory_space<vmem>>, vector<1x64xf32>
    %c0_37 = arith.constant 0 : index
    %c0_38 = arith.constant 0 : index
    %130 = vector.load %arg14[%c0_37, %c0_38] : memref<2x64xf32, #tpu.memory_space<vmem>>, vector<1x64xf32>
    %cst_39 = arith.constant dense<0.000000e+00> : vector<16xf32>
    %131 = vector.multi_reduction <add>, %128, %cst_39 [1] : vector<16x64xf32> to vector<16xf32>
    %132 = vector.shape_cast %131 : vector<16xf32> to vector<16x1xf32>
    %cst_40 = arith.constant 6.400000e+01 : f32
    %133 = vector.broadcast %cst_40 : f32 to vector<16x1xf32>
    %134 = arith.divf %132, %133 : vector<16x1xf32>
    %135 = vector.broadcast %134 : vector<16x1xf32> to vector<16x64xf32>
    %136 = arith.subf %128, %135 : vector<16x64xf32>
    %137 = arith.mulf %136, %136 : vector<16x64xf32>
    %cst_41 = arith.constant dense<0.000000e+00> : vector<16xf32>
    %138 = vector.multi_reduction <add>, %137, %cst_41 [1] : vector<16x64xf32> to vector<16xf32>
    %139 = vector.shape_cast %138 : vector<16xf32> to vector<16x1xf32>
    %cst_42 = arith.constant 6.400000e+01 : f32
    %140 = vector.broadcast %cst_42 : f32 to vector<16x1xf32>
    %141 = arith.divf %139, %140 : vector<16x1xf32>
    %cst_43 = arith.constant 9.99999974E-6 : f32
    %142 = vector.broadcast %cst_43 : f32 to vector<16x1xf32>
    %143 = arith.addf %141, %142 : vector<16x1xf32>
    %144 = math.rsqrt %143 : vector<16x1xf32>
    %145 = vector.broadcast %144 : vector<16x1xf32> to vector<16x64xf32>
    %146 = arith.mulf %136, %145 : vector<16x64xf32>
    %147 = vector.broadcast %129 : vector<1x64xf32> to vector<16x64xf32>
    %148 = arith.mulf %146, %147 : vector<16x64xf32>
    %149 = vector.broadcast %130 : vector<1x64xf32> to vector<16x64xf32>
    %150 = arith.addf %148, %149 : vector<16x64xf32>
    %151 = arith.truncf %150 : vector<16x64xf32> to vector<16x64xbf16>
    %c0_44 = arith.constant 0 : index
    %c0_45 = arith.constant 0 : index
    %c0_46 = arith.constant 0 : index
    %152 = vector.load %arg9[%c0_44, %c0_45, %c0_46] : memref<2x64x128xbf16, #tpu.memory_space<vmem>>, vector<1x64x128xbf16>
    %153 = vector.shape_cast %152 : vector<1x64x128xbf16> to vector<64x128xbf16>
    %cst_47 = arith.constant dense<0.000000e+00> : vector<16x128xf32>
    %154 = tpu.matmul %151, %153, %cst_47 {dimension_numbers = #tpu.dot_dimension_numbers<[1], [0], [0], [1], [0, 0, 1, 1], [], []>} : vector<16x64xbf16>, vector<64x128xbf16>, vector<16x128xf32> -> vector<16x128xf32>
    %c0_48 = arith.constant 0 : index
    %c0_49 = arith.constant 0 : index
    %155 = vector.load %arg10[%c0_48, %c0_49] : memref<2x128xf32, #tpu.memory_space<vmem>>, vector<1x128xf32>
    %156 = vector.broadcast %155 : vector<1x128xf32> to vector<16x128xf32>
    %157 = arith.addf %154, %156 : vector<16x128xf32>
    %cst_50 = arith.constant 0.000000e+00 : f32
    %158 = vector.broadcast %cst_50 : f32 to vector<16x128xf32>
    %159 = arith.maximumf %157, %158 : vector<16x128xf32>
    %160 = arith.truncf %159 : vector<16x128xf32> to vector<16x128xbf16>
    %c0_51 = arith.constant 0 : index
    %c0_52 = arith.constant 0 : index
    %c0_53 = arith.constant 0 : index
    %161 = vector.load %arg11[%c0_51, %c0_52, %c0_53] : memref<2x128x64xbf16, #tpu.memory_space<vmem>>, vector<1x128x64xbf16>
    %162 = vector.shape_cast %161 : vector<1x128x64xbf16> to vector<128x64xbf16>
    %cst_54 = arith.constant dense<0.000000e+00> : vector<16x64xf32>
    %163 = tpu.matmul %160, %162, %cst_54 {dimension_numbers = #tpu.dot_dimension_numbers<[1], [0], [0], [1], [0, 0, 1, 1], [], []>} : vector<16x128xbf16>, vector<128x64xbf16>, vector<16x64xf32> -> vector<16x64xf32>
    %c0_55 = arith.constant 0 : index
    %c0_56 = arith.constant 0 : index
    %164 = vector.load %arg12[%c0_55, %c0_56] : memref<2x64xf32, #tpu.memory_space<vmem>>, vector<1x64xf32>
    %165 = vector.broadcast %164 : vector<1x64xf32> to vector<16x64xf32>
    %166 = arith.addf %163, %165 : vector<16x64xf32>
    %167 = arith.addf %150, %166 : vector<16x64xf32>
    %c0_57 = arith.constant 0 : index
    %c0_58 = arith.constant 0 : index
    %168 = vector.load %arg15[%c0_57, %c0_58] : memref<2x64xf32, #tpu.memory_space<vmem>>, vector<1x64xf32>
    %c0_59 = arith.constant 0 : index
    %c0_60 = arith.constant 0 : index
    %169 = vector.load %arg16[%c0_59, %c0_60] : memref<2x64xf32, #tpu.memory_space<vmem>>, vector<1x64xf32>
    %cst_61 = arith.constant dense<0.000000e+00> : vector<16xf32>
    %170 = vector.multi_reduction <add>, %167, %cst_61 [1] : vector<16x64xf32> to vector<16xf32>
    %171 = vector.shape_cast %170 : vector<16xf32> to vector<16x1xf32>
    %cst_62 = arith.constant 6.400000e+01 : f32
    %172 = vector.broadcast %cst_62 : f32 to vector<16x1xf32>
    %173 = arith.divf %171, %172 : vector<16x1xf32>
    %174 = vector.broadcast %173 : vector<16x1xf32> to vector<16x64xf32>
    %175 = arith.subf %167, %174 : vector<16x64xf32>
    %176 = arith.mulf %175, %175 : vector<16x64xf32>
    %cst_63 = arith.constant dense<0.000000e+00> : vector<16xf32>
    %177 = vector.multi_reduction <add>, %176, %cst_63 [1] : vector<16x64xf32> to vector<16xf32>
    %178 = vector.shape_cast %177 : vector<16xf32> to vector<16x1xf32>
    %cst_64 = arith.constant 6.400000e+01 : f32
    %179 = vector.broadcast %cst_64 : f32 to vector<16x1xf32>
    %180 = arith.divf %178, %179 : vector<16x1xf32>
    %cst_65 = arith.constant 9.99999974E-6 : f32
    %181 = vector.broadcast %cst_65 : f32 to vector<16x1xf32>
    %182 = arith.addf %180, %181 : vector<16x1xf32>
    %183 = math.rsqrt %182 : vector<16x1xf32>
    %184 = vector.broadcast %183 : vector<16x1xf32> to vector<16x64xf32>
    %185 = arith.mulf %175, %184 : vector<16x64xf32>
    %186 = vector.broadcast %168 : vector<1x64xf32> to vector<16x64xf32>
    %187 = arith.mulf %185, %186 : vector<16x64xf32>
    %188 = vector.broadcast %169 : vector<1x64xf32> to vector<16x64xf32>
    %189 = arith.addf %187, %188 : vector<16x64xf32>
    %190 = arith.truncf %189 : vector<16x64xf32> to vector<16x64xbf16>
    %c1 = arith.constant 1 : index
    %c0_66 = arith.constant 0 : index
    %c0_67 = arith.constant 0 : index
    %191 = vector.load %arg5[%c1, %c0_66, %c0_67] : memref<2x64x192xbf16, #tpu.memory_space<vmem>>, vector<1x64x192xbf16>
    %192 = vector.shape_cast %191 : vector<1x64x192xbf16> to vector<64x192xbf16>
    %cst_68 = arith.constant dense<0.000000e+00> : vector<16x192xf32>
    %193 = tpu.matmul %190, %192, %cst_68 {dimension_numbers = #tpu.dot_dimension_numbers<[1], [0], [0], [1], [0, 0, 1, 1], [], []>} : vector<16x64xbf16>, vector<64x192xbf16>, vector<16x192xf32> -> vector<16x192xf32>
    %c1_69 = arith.constant 1 : index
    %c0_70 = arith.constant 0 : index
    %194 = vector.load %arg6[%c1_69, %c0_70] : memref<2x192xf32, #tpu.memory_space<vmem>>, vector<1x192xf32>
    %195 = vector.broadcast %194 : vector<1x192xf32> to vector<16x192xf32>
    %196 = arith.addf %193, %195 : vector<16x192xf32>
    %197 = vector.extract_strided_slice %196 {offsets = [0, 0], sizes = [16, 64], strides = [1, 1]} : vector<16x192xf32> to vector<16x64xf32>
    %198 = vector.shape_cast %197 : vector<16x64xf32> to vector<2x8x64xf32>
    %199 = vector.extract_strided_slice %196 {offsets = [0, 64], sizes = [16, 64], strides = [1, 1]} : vector<16x192xf32> to vector<16x64xf32>
    %200 = vector.shape_cast %199 : vector<16x64xf32> to vector<2x8x64xf32>
    %201 = vector.extract_strided_slice %196 {offsets = [0, 128], sizes = [16, 64], strides = [1, 1]} : vector<16x192xf32> to vector<16x64xf32>
    %202 = vector.shape_cast %201 : vector<16x64xf32> to vector<2x8x64xf32>
    %203 = vector.extract_strided_slice %198 {offsets = [0, 0, 0], sizes = [2, 8, 16], strides = [1, 1, 1]} : vector<2x8x64xf32> to vector<2x8x16xf32>
    %204 = arith.truncf %203 : vector<2x8x16xf32> to vector<2x8x16xbf16>
    %205 = vector.extract_strided_slice %200 {offsets = [0, 0, 0], sizes = [2, 8, 16], strides = [1, 1, 1]} : vector<2x8x64xf32> to vector<2x8x16xf32>
    %206 = arith.truncf %205 : vector<2x8x16xf32> to vector<2x8x16xbf16>
    %207 = vector.extract_strided_slice %202 {offsets = [0, 0, 0], sizes = [2, 8, 16], strides = [1, 1, 1]} : vector<2x8x64xf32> to vector<2x8x16xf32>
    %208 = arith.truncf %207 : vector<2x8x16xf32> to vector<2x8x16xbf16>
    "tpu.trace_start"() <{level = 10 : i32, message = "bqd,bkd->bqk"}> : () -> ()
    %cst_71 = arith.constant dense<0.000000e+00> : vector<2x8x8xf32>
    %209 = tpu.matmul %204, %206, %cst_71 {dimension_numbers = #tpu.dot_dimension_numbers<[2], [2], [1], [1], [0, 0, 0, 1, 1, 1], [0], [0]>} : vector<2x8x16xbf16>, vector<2x8x16xbf16>, vector<2x8x8xf32> -> vector<2x8x8xf32>
    "tpu.trace_stop"() : () -> ()
    %cst_72 = arith.constant dense<0xFF800000> : vector<2x8xf32>
    %210 = vector.multi_reduction <maximumf>, %209, %cst_72 [2] : vector<2x8x8xf32> to vector<2x8xf32>
    %211 = vector.shape_cast %210 : vector<2x8xf32> to vector<2x8x1xf32>
    %212 = vector.broadcast %211 : vector<2x8x1xf32> to vector<2x8x8xf32>
    %213 = arith.subf %209, %212 : vector<2x8x8xf32>
    %214 = math.exp %213 : vector<2x8x8xf32>
    %cst_73 = arith.constant dense<0.000000e+00> : vector<2x8xf32>
    %215 = vector.multi_reduction <add>, %214, %cst_73 [2] : vector<2x8x8xf32> to vector<2x8xf32>
    %216 = vector.shape_cast %215 : vector<2x8xf32> to vector<2x8x1xf32>
    %217 = tpu.reciprocal %216 {approx = true} : vector<2x8x1xf32> -> vector<2x8x1xf32>
    %218 = vector.broadcast %217 : vector<2x8x1xf32> to vector<2x8x8xf32>
    %219 = arith.mulf %214, %218 : vector<2x8x8xf32>
    %220 = arith.truncf %219 : vector<2x8x8xf32> to vector<2x8x8xbf16>
    "tpu.trace_start"() <{level = 10 : i32, message = "bqk,bkd->bqd"}> : () -> ()
    %cst_74 = arith.constant dense<0.000000e+00> : vector<2x8x16xf32>
    %221 = tpu.matmul %220, %208, %cst_74 {dimension_numbers = #tpu.dot_dimension_numbers<[2], [1], [1], [2], [0, 0, 0, 1, 1, 2], [0], [0]>} : vector<2x8x8xbf16>, vector<2x8x16xbf16>, vector<2x8x16xf32> -> vector<2x8x16xf32>
    "tpu.trace_stop"() : () -> ()
    %222 = vector.extract_strided_slice %198 {offsets = [0, 0, 16], sizes = [2, 8, 16], strides = [1, 1, 1]} : vector<2x8x64xf32> to vector<2x8x16xf32>
    %223 = arith.truncf %222 : vector<2x8x16xf32> to vector<2x8x16xbf16>
    %224 = vector.extract_strided_slice %200 {offsets = [0, 0, 16], sizes = [2, 8, 16], strides = [1, 1, 1]} : vector<2x8x64xf32> to vector<2x8x16xf32>
    %225 = arith.truncf %224 : vector<2x8x16xf32> to vector<2x8x16xbf16>
    %226 = vector.extract_strided_slice %202 {offsets = [0, 0, 16], sizes = [2, 8, 16], strides = [1, 1, 1]} : vector<2x8x64xf32> to vector<2x8x16xf32>
    %227 = arith.truncf %226 : vector<2x8x16xf32> to vector<2x8x16xbf16>
    "tpu.trace_start"() <{level = 10 : i32, message = "bqd,bkd->bqk"}> : () -> ()
    %cst_75 = arith.constant dense<0.000000e+00> : vector<2x8x8xf32>
    %228 = tpu.matmul %223, %225, %cst_75 {dimension_numbers = #tpu.dot_dimension_numbers<[2], [2], [1], [1], [0, 0, 0, 1, 1, 1], [0], [0]>} : vector<2x8x16xbf16>, vector<2x8x16xbf16>, vector<2x8x8xf32> -> vector<2x8x8xf32>
    "tpu.trace_stop"() : () -> ()
    %cst_76 = arith.constant dense<0xFF800000> : vector<2x8xf32>
    %229 = vector.multi_reduction <maximumf>, %228, %cst_76 [2] : vector<2x8x8xf32> to vector<2x8xf32>
    %230 = vector.shape_cast %229 : vector<2x8xf32> to vector<2x8x1xf32>
    %231 = vector.broadcast %230 : vector<2x8x1xf32> to vector<2x8x8xf32>
    %232 = arith.subf %228, %231 : vector<2x8x8xf32>
    %233 = math.exp %232 : vector<2x8x8xf32>
    %cst_77 = arith.constant dense<0.000000e+00> : vector<2x8xf32>
    %234 = vector.multi_reduction <add>, %233, %cst_77 [2] : vector<2x8x8xf32> to vector<2x8xf32>
    %235 = vector.shape_cast %234 : vector<2x8xf32> to vector<2x8x1xf32>
    %236 = tpu.reciprocal %235 {approx = true} : vector<2x8x1xf32> -> vector<2x8x1xf32>
    %237 = vector.broadcast %236 : vector<2x8x1xf32> to vector<2x8x8xf32>
    %238 = arith.mulf %233, %237 : vector<2x8x8xf32>
    %239 = arith.truncf %238 : vector<2x8x8xf32> to vector<2x8x8xbf16>
    "tpu.trace_start"() <{level = 10 : i32, message = "bqk,bkd->bqd"}> : () -> ()
    %cst_78 = arith.constant dense<0.000000e+00> : vector<2x8x16xf32>
    %240 = tpu.matmul %239, %227, %cst_78 {dimension_numbers = #tpu.dot_dimension_numbers<[2], [1], [1], [2], [0, 0, 0, 1, 1, 2], [0], [0]>} : vector<2x8x8xbf16>, vector<2x8x16xbf16>, vector<2x8x16xf32> -> vector<2x8x16xf32>
    "tpu.trace_stop"() : () -> ()
    %241 = vector.extract_strided_slice %198 {offsets = [0, 0, 32], sizes = [2, 8, 16], strides = [1, 1, 1]} : vector<2x8x64xf32> to vector<2x8x16xf32>
    %242 = arith.truncf %241 : vector<2x8x16xf32> to vector<2x8x16xbf16>
    %243 = vector.extract_strided_slice %200 {offsets = [0, 0, 32], sizes = [2, 8, 16], strides = [1, 1, 1]} : vector<2x8x64xf32> to vector<2x8x16xf32>
    %244 = arith.truncf %243 : vector<2x8x16xf32> to vector<2x8x16xbf16>
    %245 = vector.extract_strided_slice %202 {offsets = [0, 0, 32], sizes = [2, 8, 16], strides = [1, 1, 1]} : vector<2x8x64xf32> to vector<2x8x16xf32>
    %246 = arith.truncf %245 : vector<2x8x16xf32> to vector<2x8x16xbf16>
    "tpu.trace_start"() <{level = 10 : i32, message = "bqd,bkd->bqk"}> : () -> ()
    %cst_79 = arith.constant dense<0.000000e+00> : vector<2x8x8xf32>
    %247 = tpu.matmul %242, %244, %cst_79 {dimension_numbers = #tpu.dot_dimension_numbers<[2], [2], [1], [1], [0, 0, 0, 1, 1, 1], [0], [0]>} : vector<2x8x16xbf16>, vector<2x8x16xbf16>, vector<2x8x8xf32> -> vector<2x8x8xf32>
    "tpu.trace_stop"() : () -> ()
    %cst_80 = arith.constant dense<0xFF800000> : vector<2x8xf32>
    %248 = vector.multi_reduction <maximumf>, %247, %cst_80 [2] : vector<2x8x8xf32> to vector<2x8xf32>
    %249 = vector.shape_cast %248 : vector<2x8xf32> to vector<2x8x1xf32>
    %250 = vector.broadcast %249 : vector<2x8x1xf32> to vector<2x8x8xf32>
    %251 = arith.subf %247, %250 : vector<2x8x8xf32>
    %252 = math.exp %251 : vector<2x8x8xf32>
    %cst_81 = arith.constant dense<0.000000e+00> : vector<2x8xf32>
    %253 = vector.multi_reduction <add>, %252, %cst_81 [2] : vector<2x8x8xf32> to vector<2x8xf32>
    %254 = vector.shape_cast %253 : vector<2x8xf32> to vector<2x8x1xf32>
    %255 = tpu.reciprocal %254 {approx = true} : vector<2x8x1xf32> -> vector<2x8x1xf32>
    %256 = vector.broadcast %255 : vector<2x8x1xf32> to vector<2x8x8xf32>
    %257 = arith.mulf %252, %256 : vector<2x8x8xf32>
    %258 = arith.truncf %257 : vector<2x8x8xf32> to vector<2x8x8xbf16>
    "tpu.trace_start"() <{level = 10 : i32, message = "bqk,bkd->bqd"}> : () -> ()
    %cst_82 = arith.constant dense<0.000000e+00> : vector<2x8x16xf32>
    %259 = tpu.matmul %258, %246, %cst_82 {dimension_numbers = #tpu.dot_dimension_numbers<[2], [1], [1], [2], [0, 0, 0, 1, 1, 2], [0], [0]>} : vector<2x8x8xbf16>, vector<2x8x16xbf16>, vector<2x8x16xf32> -> vector<2x8x16xf32>
    "tpu.trace_stop"() : () -> ()
    %260 = vector.extract_strided_slice %198 {offsets = [0, 0, 48], sizes = [2, 8, 16], strides = [1, 1, 1]} : vector<2x8x64xf32> to vector<2x8x16xf32>
    %261 = arith.truncf %260 : vector<2x8x16xf32> to vector<2x8x16xbf16>
    %262 = vector.extract_strided_slice %200 {offsets = [0, 0, 48], sizes = [2, 8, 16], strides = [1, 1, 1]} : vector<2x8x64xf32> to vector<2x8x16xf32>
    %263 = arith.truncf %262 : vector<2x8x16xf32> to vector<2x8x16xbf16>
    %264 = vector.extract_strided_slice %202 {offsets = [0, 0, 48], sizes = [2, 8, 16], strides = [1, 1, 1]} : vector<2x8x64xf32> to vector<2x8x16xf32>
    %265 = arith.truncf %264 : vector<2x8x16xf32> to vector<2x8x16xbf16>
    "tpu.trace_start"() <{level = 10 : i32, message = "bqd,bkd->bqk"}> : () -> ()
    %cst_83 = arith.constant dense<0.000000e+00> : vector<2x8x8xf32>
    %266 = tpu.matmul %261, %263, %cst_83 {dimension_numbers = #tpu.dot_dimension_numbers<[2], [2], [1], [1], [0, 0, 0, 1, 1, 1], [0], [0]>} : vector<2x8x16xbf16>, vector<2x8x16xbf16>, vector<2x8x8xf32> -> vector<2x8x8xf32>
    "tpu.trace_stop"() : () -> ()
    %cst_84 = arith.constant dense<0xFF800000> : vector<2x8xf32>
    %267 = vector.multi_reduction <maximumf>, %266, %cst_84 [2] : vector<2x8x8xf32> to vector<2x8xf32>
    %268 = vector.shape_cast %267 : vector<2x8xf32> to vector<2x8x1xf32>
    %269 = vector.broadcast %268 : vector<2x8x1xf32> to vector<2x8x8xf32>
    %270 = arith.subf %266, %269 : vector<2x8x8xf32>
    %271 = math.exp %270 : vector<2x8x8xf32>
    %cst_85 = arith.constant dense<0.000000e+00> : vector<2x8xf32>
    %272 = vector.multi_reduction <add>, %271, %cst_85 [2] : vector<2x8x8xf32> to vector<2x8xf32>
    %273 = vector.shape_cast %272 : vector<2x8xf32> to vector<2x8x1xf32>
    %274 = tpu.reciprocal %273 {approx = true} : vector<2x8x1xf32> -> vector<2x8x1xf32>
    %275 = vector.broadcast %274 : vector<2x8x1xf32> to vector<2x8x8xf32>
    %276 = arith.mulf %271, %275 : vector<2x8x8xf32>
    %277 = arith.truncf %276 : vector<2x8x8xf32> to vector<2x8x8xbf16>
    "tpu.trace_start"() <{level = 10 : i32, message = "bqk,bkd->bqd"}> : () -> ()
    %cst_86 = arith.constant dense<0.000000e+00> : vector<2x8x16xf32>
    %278 = tpu.matmul %277, %265, %cst_86 {dimension_numbers = #tpu.dot_dimension_numbers<[2], [1], [1], [2], [0, 0, 0, 1, 1, 2], [0], [0]>} : vector<2x8x8xbf16>, vector<2x8x16xbf16>, vector<2x8x16xf32> -> vector<2x8x16xf32>
    "tpu.trace_stop"() : () -> ()
    %279 = tpu.concatenate %221, %240, %259, %278 in 2 : vector<2x8x16xf32>, vector<2x8x16xf32>, vector<2x8x16xf32>, vector<2x8x16xf32> -> vector<2x8x64xf32>
    %280 = vector.extract_strided_slice %279 {offsets = [0, 7, 0], sizes = [2, 1, 64], strides = [1, 1, 1]} : vector<2x8x64xf32> to vector<2x1x64xf32>
    %281 = vector.shape_cast %280 : vector<2x1x64xf32> to vector<2x64xf32>
    %282 = vector.shape_cast %189 : vector<16x64xf32> to vector<2x8x64xf32>
    %283 = vector.extract_strided_slice %282 {offsets = [0, 7, 0], sizes = [2, 1, 64], strides = [1, 1, 1]} : vector<2x8x64xf32> to vector<2x1x64xf32>
    %284 = vector.shape_cast %283 : vector<2x1x64xf32> to vector<2x64xf32>
    %285 = arith.truncf %281 : vector<2x64xf32> to vector<2x64xbf16>
    %c1_87 = arith.constant 1 : index
    %c0_88 = arith.constant 0 : index
    %c0_89 = arith.constant 0 : index
    %286 = vector.load %arg7[%c1_87, %c0_88, %c0_89] : memref<2x64x64xbf16, #tpu.memory_space<vmem>>, vector<1x64x64xbf16>
    %287 = vector.shape_cast %286 : vector<1x64x64xbf16> to vector<64x64xbf16>
    %cst_90 = arith.constant dense<0.000000e+00> : vector<2x64xf32>
    %288 = tpu.matmul %285, %287, %cst_90 {dimension_numbers = #tpu.dot_dimension_numbers<[1], [0], [0], [1], [0, 0, 1, 1], [], []>} : vector<2x64xbf16>, vector<64x64xbf16>, vector<2x64xf32> -> vector<2x64xf32>
    %c1_91 = arith.constant 1 : index
    %c0_92 = arith.constant 0 : index
    %289 = vector.load %arg8[%c1_91, %c0_92] : memref<2x64xf32, #tpu.memory_space<vmem>>, vector<1x64xf32>
    %290 = vector.broadcast %289 : vector<1x64xf32> to vector<2x64xf32>
    %291 = arith.addf %288, %290 : vector<2x64xf32>
    %292 = arith.addf %284, %291 : vector<2x64xf32>
    %c1_93 = arith.constant 1 : index
    %c0_94 = arith.constant 0 : index
    %293 = vector.load %arg13[%c1_93, %c0_94] : memref<2x64xf32, #tpu.memory_space<vmem>>, vector<1x64xf32>
    %c1_95 = arith.constant 1 : index
    %c0_96 = arith.constant 0 : index
    %294 = vector.load %arg14[%c1_95, %c0_96] : memref<2x64xf32, #tpu.memory_space<vmem>>, vector<1x64xf32>
    %cst_97 = arith.constant dense<0.000000e+00> : vector<2xf32>
    %295 = vector.multi_reduction <add>, %292, %cst_97 [1] : vector<2x64xf32> to vector<2xf32>
    %296 = vector.shape_cast %295 : vector<2xf32> to vector<2x1xf32>
    %cst_98 = arith.constant 6.400000e+01 : f32
    %297 = vector.broadcast %cst_98 : f32 to vector<2x1xf32>
    %298 = arith.divf %296, %297 : vector<2x1xf32>
    %299 = vector.broadcast %298 : vector<2x1xf32> to vector<2x64xf32>
    %300 = arith.subf %292, %299 : vector<2x64xf32>
    %301 = arith.mulf %300, %300 : vector<2x64xf32>
    %cst_99 = arith.constant dense<0.000000e+00> : vector<2xf32>
    %302 = vector.multi_reduction <add>, %301, %cst_99 [1] : vector<2x64xf32> to vector<2xf32>
    %303 = vector.shape_cast %302 : vector<2xf32> to vector<2x1xf32>
    %cst_100 = arith.constant 6.400000e+01 : f32
    %304 = vector.broadcast %cst_100 : f32 to vector<2x1xf32>
    %305 = arith.divf %303, %304 : vector<2x1xf32>
    %cst_101 = arith.constant 9.99999974E-6 : f32
    %306 = vector.broadcast %cst_101 : f32 to vector<2x1xf32>
    %307 = arith.addf %305, %306 : vector<2x1xf32>
    %308 = math.rsqrt %307 : vector<2x1xf32>
    %309 = vector.broadcast %308 : vector<2x1xf32> to vector<2x64xf32>
    %310 = arith.mulf %300, %309 : vector<2x64xf32>
    %311 = vector.broadcast %293 : vector<1x64xf32> to vector<2x64xf32>
    %312 = arith.mulf %310, %311 : vector<2x64xf32>
    %313 = vector.broadcast %294 : vector<1x64xf32> to vector<2x64xf32>
    %314 = arith.addf %312, %313 : vector<2x64xf32>
    %315 = arith.truncf %314 : vector<2x64xf32> to vector<2x64xbf16>
    %c1_102 = arith.constant 1 : index
    %c0_103 = arith.constant 0 : index
    %c0_104 = arith.constant 0 : index
    %316 = vector.load %arg9[%c1_102, %c0_103, %c0_104] : memref<2x64x128xbf16, #tpu.memory_space<vmem>>, vector<1x64x128xbf16>
    %317 = vector.shape_cast %316 : vector<1x64x128xbf16> to vector<64x128xbf16>
    %cst_105 = arith.constant dense<0.000000e+00> : vector<2x128xf32>
    %318 = tpu.matmul %315, %317, %cst_105 {dimension_numbers = #tpu.dot_dimension_numbers<[1], [0], [0], [1], [0, 0, 1, 1], [], []>} : vector<2x64xbf16>, vector<64x128xbf16>, vector<2x128xf32> -> vector<2x128xf32>
    %c1_106 = arith.constant 1 : index
    %c0_107 = arith.constant 0 : index
    %319 = vector.load %arg10[%c1_106, %c0_107] : memref<2x128xf32, #tpu.memory_space<vmem>>, vector<1x128xf32>
    %320 = vector.broadcast %319 : vector<1x128xf32> to vector<2x128xf32>
    %321 = arith.addf %318, %320 : vector<2x128xf32>
    %cst_108 = arith.constant 0.000000e+00 : f32
    %322 = vector.broadcast %cst_108 : f32 to vector<2x128xf32>
    %323 = arith.maximumf %321, %322 : vector<2x128xf32>
    %324 = arith.truncf %323 : vector<2x128xf32> to vector<2x128xbf16>
    %c1_109 = arith.constant 1 : index
    %c0_110 = arith.constant 0 : index
    %c0_111 = arith.constant 0 : index
    %325 = vector.load %arg11[%c1_109, %c0_110, %c0_111] : memref<2x128x64xbf16, #tpu.memory_space<vmem>>, vector<1x128x64xbf16>
    %326 = vector.shape_cast %325 : vector<1x128x64xbf16> to vector<128x64xbf16>
    %cst_112 = arith.constant dense<0.000000e+00> : vector<2x64xf32>
    %327 = tpu.matmul %324, %326, %cst_112 {dimension_numbers = #tpu.dot_dimension_numbers<[1], [0], [0], [1], [0, 0, 1, 1], [], []>} : vector<2x128xbf16>, vector<128x64xbf16>, vector<2x64xf32> -> vector<2x64xf32>
    %c1_113 = arith.constant 1 : index
    %c0_114 = arith.constant 0 : index
    %328 = vector.load %arg12[%c1_113, %c0_114] : memref<2x64xf32, #tpu.memory_space<vmem>>, vector<1x64xf32>
    %329 = vector.broadcast %328 : vector<1x64xf32> to vector<2x64xf32>
    %330 = arith.addf %327, %329 : vector<2x64xf32>
    %331 = arith.addf %314, %330 : vector<2x64xf32>
    %c1_115 = arith.constant 1 : index
    %c0_116 = arith.constant 0 : index
    %332 = vector.load %arg15[%c1_115, %c0_116] : memref<2x64xf32, #tpu.memory_space<vmem>>, vector<1x64xf32>
    %c1_117 = arith.constant 1 : index
    %c0_118 = arith.constant 0 : index
    %333 = vector.load %arg16[%c1_117, %c0_118] : memref<2x64xf32, #tpu.memory_space<vmem>>, vector<1x64xf32>
    %cst_119 = arith.constant dense<0.000000e+00> : vector<2xf32>
    %334 = vector.multi_reduction <add>, %331, %cst_119 [1] : vector<2x64xf32> to vector<2xf32>
    %335 = vector.shape_cast %334 : vector<2xf32> to vector<2x1xf32>
    %cst_120 = arith.constant 6.400000e+01 : f32
    %336 = vector.broadcast %cst_120 : f32 to vector<2x1xf32>
    %337 = arith.divf %335, %336 : vector<2x1xf32>
    %338 = vector.broadcast %337 : vector<2x1xf32> to vector<2x64xf32>
    %339 = arith.subf %331, %338 : vector<2x64xf32>
    %340 = arith.mulf %339, %339 : vector<2x64xf32>
    %cst_121 = arith.constant dense<0.000000e+00> : vector<2xf32>
    %341 = vector.multi_reduction <add>, %340, %cst_121 [1] : vector<2x64xf32> to vector<2xf32>
    %342 = vector.shape_cast %341 : vector<2xf32> to vector<2x1xf32>
    %cst_122 = arith.constant 6.400000e+01 : f32
    %343 = vector.broadcast %cst_122 : f32 to vector<2x1xf32>
    %344 = arith.divf %342, %343 : vector<2x1xf32>
    %cst_123 = arith.constant 9.99999974E-6 : f32
    %345 = vector.broadcast %cst_123 : f32 to vector<2x1xf32>
    %346 = arith.addf %344, %345 : vector<2x1xf32>
    %347 = math.rsqrt %346 : vector<2x1xf32>
    %348 = vector.broadcast %347 : vector<2x1xf32> to vector<2x64xf32>
    %349 = arith.mulf %339, %348 : vector<2x64xf32>
    %350 = vector.broadcast %332 : vector<1x64xf32> to vector<2x64xf32>
    %351 = arith.mulf %349, %350 : vector<2x64xf32>
    %352 = vector.broadcast %333 : vector<1x64xf32> to vector<2x64xf32>
    %353 = arith.addf %351, %352 : vector<2x64xf32>
    %354 = arith.truncf %353 : vector<2x64xf32> to vector<2x64xbf16>
    %c0_124 = arith.constant 0 : index
    %c0_125 = arith.constant 0 : index
    %355 = vector.load %arg17[%c0_124, %c0_125] : memref<64x128xbf16, #tpu.memory_space<vmem>>, vector<64x128xbf16>
    %cst_126 = arith.constant dense<0.000000e+00> : vector<2x128xf32>
    %356 = tpu.matmul %354, %355, %cst_126 {dimension_numbers = #tpu.dot_dimension_numbers<[1], [0], [0], [1], [0, 0, 1, 1], [], []>} : vector<2x64xbf16>, vector<64x128xbf16>, vector<2x128xf32> -> vector<2x128xf32>
    %c0_127 = arith.constant 0 : index
    %c0_128 = arith.constant 0 : index
    %357 = vector.load %arg18[%c0_127, %c0_128] : memref<1x128xf32, #tpu.memory_space<vmem>>, vector<1x128xf32>
    %358 = vector.broadcast %357 : vector<1x128xf32> to vector<2x128xf32>
    %359 = arith.addf %356, %358 : vector<2x128xf32>
    %c0_129 = arith.constant 0 : index
    %c0_130 = arith.constant 0 : index
    %360 = vector.load %arg19[%c0_129, %c0_130] : memref<2x128xf32, #tpu.memory_space<vmem>>, vector<2x128xf32>
    tpu.vector_store %arg19[%c0_129, %c0_130], %359 {strides = array<i32>} : memref<2x128xf32, #tpu.memory_space<vmem>>, vector<2x128xf32>,
    return
  }
  func.func @transform_0(%arg0: i32) -> (i32, i32, i32) {
    %c0_i32 = arith.constant 0 : i32
    %c0_i32_0 = arith.constant 0 : i32
    %c0_i32_1 = arith.constant 0 : i32
    return %arg0, %c0_i32, %c0_i32_0 : i32, i32, i32
  }
  func.func @transform_1(%arg0: i32) -> (i32, i32) {
    %c0_i32 = arith.constant 0 : i32
    %c0_i32_0 = arith.constant 0 : i32
    %c0_i32_1 = arith.constant 0 : i32
    return %c0_i32, %c0_i32_0 : i32, i32
  }
  func.func @transform_2(%arg0: i32) -> (i32, i32) {
    %c0_i32 = arith.constant 0 : i32
    %c0_i32_0 = arith.constant 0 : i32
    %c0_i32_1 = arith.constant 0 : i32
    return %c0_i32, %c0_i32_0 : i32, i32
  }
  func.func @transform_3(%arg0: i32) -> (i32, i32) {
    %c0_i32 = arith.constant 0 : i32
    %c0_i32_0 = arith.constant 0 : i32
    %c0_i32_1 = arith.constant 0 : i32
    return %c0_i32, %c0_i32_0 : i32, i32
  }
  func.func @transform_4(%arg0: i32) -> (i32, i32, i32) {
    %c0_i32 = arith.constant 0 : i32
    %c0_i32_0 = arith.constant 0 : i32
    %c0_i32_1 = arith.constant 0 : i32
    %c0_i32_2 = arith.constant 0 : i32
    return %c0_i32, %c0_i32_0, %c0_i32_1 : i32, i32, i32
  }
  func.func @transform_5(%arg0: i32) -> (i32, i32) {
    %c0_i32 = arith.constant 0 : i32
    %c0_i32_0 = arith.constant 0 : i32
    %c0_i32_1 = arith.constant 0 : i32
    return %c0_i32, %c0_i32_0 : i32, i32
  }
  func.func @transform_6(%arg0: i32) -> (i32, i32, i32) {
    %c0_i32 = arith.constant 0 : i32
    %c0_i32_0 = arith.constant 0 : i32
    %c0_i32_1 = arith.constant 0 : i32
    %c0_i32_2 = arith.constant 0 : i32
    return %c0_i32, %c0_i32_0, %c0_i32_1 : i32, i32, i32
  }
  func.func @transform_7(%arg0: i32) -> (i32, i32) {
    %c0_i32 = arith.constant 0 : i32
    %c0_i32_0 = arith.constant 0 : i32
    %c0_i32_1 = arith.constant 0 : i32
    return %c0_i32, %c0_i32_0 : i32, i32
  }
  func.func @transform_8(%arg0: i32) -> (i32, i32, i32) {
    %c0_i32 = arith.constant 0 : i32
    %c0_i32_0 = arith.constant 0 : i32
    %c0_i32_1 = arith.constant 0 : i32
    %c0_i32_2 = arith.constant 0 : i32
    return %c0_i32, %c0_i32_0, %c0_i32_1 : i32, i32, i32
  }
  func.func @transform_9(%arg0: i32) -> (i32, i32) {
    %c0_i32 = arith.constant 0 : i32
    %c0_i32_0 = arith.constant 0 : i32
    %c0_i32_1 = arith.constant 0 : i32
    return %c0_i32, %c0_i32_0 : i32, i32
  }
  func.func @transform_10(%arg0: i32) -> (i32, i32, i32) {
    %c0_i32 = arith.constant 0 : i32
    %c0_i32_0 = arith.constant 0 : i32
    %c0_i32_1 = arith.constant 0 : i32
    %c0_i32_2 = arith.constant 0 : i32
    return %c0_i32, %c0_i32_0, %c0_i32_1 : i32, i32, i32
  }
  func.func @transform_11(%arg0: i32) -> (i32, i32) {
    %c0_i32 = arith.constant 0 : i32
    %c0_i32_0 = arith.constant 0 : i32
    %c0_i32_1 = arith.constant 0 : i32
    return %c0_i32, %c0_i32_0 : i32, i32
  }
  func.func @transform_12(%arg0: i32) -> (i32, i32) {
    %c0_i32 = arith.constant 0 : i32
    %c0_i32_0 = arith.constant 0 : i32
    %c0_i32_1 = arith.constant 0 : i32
    return %c0_i32, %c0_i32_0 : i32, i32
  }
  func.func @transform_13(%arg0: i32) -> (i32, i32) {
    %c0_i32 = arith.constant 0 : i32
    %c0_i32_0 = arith.constant 0 : i32
    %c0_i32_1 = arith.constant 0 : i32
    return %c0_i32, %c0_i32_0 : i32, i32
  }
  func.func @transform_14(%arg0: i32) -> (i32, i32) {
    %c0_i32 = arith.constant 0 : i32
    %c0_i32_0 = arith.constant 0 : i32
    %c0_i32_1 = arith.constant 0 : i32
    return %c0_i32, %c0_i32_0 : i32, i32
  }
  func.func @transform_15(%arg0: i32) -> (i32, i32) {
    %c0_i32 = arith.constant 0 : i32
    %c0_i32_0 = arith.constant 0 : i32
    %c0_i32_1 = arith.constant 0 : i32
    return %c0_i32, %c0_i32_0 : i32, i32
  }
  func.func @transform_16(%arg0: i32) -> (i32, i32) {
    %c0_i32 = arith.constant 0 : i32
    %c0_i32_0 = arith.constant 0 : i32
    %c0_i32_1 = arith.constant 0 : i32
    return %c0_i32, %c0_i32_0 : i32, i32
  }
  func.func @transform_17(%arg0: i32) -> (i32, i32) {
    %c0_i32 = arith.constant 0 : i32
    %c0_i32_0 = arith.constant 0 : i32
    %c0_i32_1 = arith.constant 0 : i32
    return %c0_i32, %c0_i32_0 : i32, i32
  }
  func.func @transform_18(%arg0: i32) -> (i32, i32) {
    %c0_i32 = arith.constant 0 : i32
    %c0_i32_0 = arith.constant 0 : i32
    return %arg0, %c0_i32 : i32, i32
  }
}

</mosaic_0001>

<bundles_post_ra>
// kernel: tpu_custom_call.1
= control target key start
LH: loop header
LB: loop body
LE: loop exit
PB: predicated region body
PF: predicated region fallthrough
CT: control target
= control target key end

     0   :  { %s3582_s0 = inlined_call_operand.vmem [shape: f32[2,8,3], index: 0, kind: input, shape index: {}]   ;;  %s3583_s1 = inlined_call_operand.hbm [shape: f32[3,64], index: 1, kind: input, shape index: {}]   ;;  %s3584_s2 = inlined_call_operand.vmem [shape: f32[1,64], index: 2, kind: input, shape index: {}]   ;;  %s3585_s3 = inlined_call_operand.hbm [shape: f32[8,64], index: 3, kind: input, shape index: {}]   ;;  %s3586_s4 = inlined_call_operand.vmem [shape: bf16[2,64,192], index: 4, kind: input, shape index: {}]   ;;  %s3587_s5 = inlined_call_operand.hbm [shape: f32[2,192], index: 5, kind: input, shape index: {}]   ;;  %s3588_s6 = inlined_call_operand.vmem [shape: bf16[2,64,64], index: 6, kind: input, shape index: {}]   ;;  %s3589_s7 = inlined_call_operand.hbm [shape: f32[2,64], index: 7, kind: input, shape index: {}]   ;;  %s3590_s8 = inlined_call_operand.hbm [shape: bf16[2,64,128], index: 8, kind: input, shape index: {}]   ;;  %s3591_s9 = inlined_call_operand.hbm [shape: f32[2,128], index: 9, kind: input, shape index: {}]   ;;  %s3592_s10 = inlined_call_operand.vmem [shape: bf16[2,128,64], index: 10, kind: input, shape index: {}]   ;;  %s3593_s11 = inlined_call_operand.hbm [shape: f32[2,64], index: 11, kind: input, shape index: {}]   ;;  %s3594_s12 = inlined_call_operand.hbm [shape: f32[2,64], index: 12, kind: input, shape index: {}]   ;;  %s3595_s13 = inlined_call_operand.hbm [shape: f32[2,64], index: 13, kind: input, shape index: {}]   ;;  %s3596_s14 = inlined_call_operand.hbm [shape: f32[2,64], index: 14, kind: input, shape index: {}]   ;;  %s3597_s15 = inlined_call_operand.vmem [shape: f32[2,64], index: 15, kind: input, shape index: {}]   ;;  %s3598_s16 = inlined_call_operand.vmem [shape: bf16[64,128], index: 16, kind: input, shape index: {}]   ;;  %s3599_s17 = inlined_call_operand.vmem [shape: f32[1,128], index: 17, kind: input, shape index: {}]   ;;  %s3600_s18 = inlined_call_operand.hbm [shape: f32[2,128], index: 18, kind: output, shape index: {}]  }
   0x1   :  { %3602 = sst [smem:[#allocation27_spill]] %s3582_s0 }
   0x2   :  { %3603 = sst [smem:[#allocation28_spill]] %s3583_s1 }
   0x3   :  { %3604 = sst [smem:[#allocation29_spill]] %s3584_s2 }
   0x4   :  { %23 = vsyncpa [#allocation3], 0 }
   0x5   :  { %24 = vsyncpa [#allocation6], 0 }
   0x6   :  { %25 = vsyncpa [#allocation9], 0 }
   0x7   :  { %26 = vsyncpa [#allocation12], 0 }
   0x8   :  { %27 = vsyncpa [#allocation15], 0 }
   0x9   :  { %28 = vsyncpa [#allocation18], 0  ;;  %s50_s29 = sshll.u32 %s3585_s3, 4  ;;  %s51_s29 = int_to_ptr.hbm [resolvable:$true] %s50_s29 }
   0xa   :  { %29 = vsyncpa [#allocation4], 0  ;;  %s2919_s30 = smov [#allocation5]   ;;  %s76_s20 = sshll.u32 %s3589_s7, 4  ;;  %s77_s20 = int_to_ptr.hbm [resolvable:$true] %s76_s20 }
   0xb   :  { %s52_s0 = sshll.u32 %s2919_s30, 4  ;;  %s2920_s21 = smov [#allocation8]   ;;  %s53_s0 = int_to_ptr.vmem [resolvable:$true] %s52_s0 }
   0xc   :  { %55 = dma.hbm_to_vmem [thread:$0]  %s51_s29, 128, %s53_s0, [#allocation6]  }
   0xd   :  { %s78_s22 = sshll.u32 %s2920_s21, 4  ;;  %s100_s24 = sshll.u32 %s3591_s9, 4  ;;  %s79_s22 = int_to_ptr.vmem [resolvable:$true] %s78_s22  ;;  %s101_s24 = int_to_ptr.hbm [resolvable:$true] %s100_s24 }
   0xe   :  { %81 = dma.hbm_to_vmem [thread:$0]  %s77_s20, 32, %s79_s22, [#allocation9]  }
   0xf   :  { %s124_s26 = sshll.u32 %s3594_s12, 4  ;;  %s2921_s27 = smov [#allocation11]   ;;  %s125_s26 = int_to_ptr.hbm [resolvable:$true] %s124_s26 }
  0x10   :  { %s102_s28 = sshll.u32 %s2921_s27, 4  ;;  %s2922_s7 = smov [#allocation14]   ;;  %s103_s28 = int_to_ptr.vmem [resolvable:$true] %s102_s28 }
  0x11   :  { %105 = dma.hbm_to_vmem [thread:$0]  %s101_s24, 32, %s103_s28, [#allocation12]  }
  0x12   :  { %s126_s29 = sshll.u32 %s2922_s7, 4  ;;  %s3605_s19 = sld [smem:[#allocation28_spill]]  ;;  %s127_s29 = int_to_ptr.vmem [resolvable:$true] %s126_s29 }
  0x13   :  { %129 = dma.hbm_to_vmem [thread:$0]  %s125_s26, 32, %s127_s29, [#allocation15]  }
  0x14   :  { %s63_s21 = sshll.u32 %s3587_s5, 4  ;;  %s2923_s22 = smov [#allocation2]   ;;  %s64_s21 = int_to_ptr.hbm [resolvable:$true] %s63_s21 }
  0x15   :  { %s39_s12 = sshll.u32 %s2923_s22, 4  ;;  %s2924_s2 = smov [#allocation7]   ;;  %s40_s12 = int_to_ptr.vmem [resolvable:$true] %s39_s12 }
  0x16   :  { %s65_s23 = sshll.u32 %s2924_s2, 4  ;;  %s86_s25 = sshll.u32 %s3590_s8, 4  ;;  %s66_s23 = int_to_ptr.vmem [resolvable:$true] %s65_s23  ;;  %s87_s25 = int_to_ptr.hbm [resolvable:$true] %s86_s25 }
  0x17   :  { %68 = dma.hbm_to_vmem [thread:$0]  %s64_s21, 64, %s66_s23, [#allocation6]  }
  0x18   :  { %s37_s1 = sshll.u32 %s3605_s19, 4  ;;  %s2925_s27 = smov [#allocation10]   ;;  %s38_s1 = int_to_ptr.hbm [resolvable:$true] %s37_s1 }
  0x19   :  { %42 = dma.hbm_to_vmem [thread:$0]  %s38_s1, 64, %s40_s12, [#allocation3]  }
  0x1a   :  { %s88_s26 = sshll.u32 %s2925_s27, 4  ;;  %s113_s5 = sshll.u32 %s3593_s11, 4  ;;  %s89_s26 = int_to_ptr.vmem [resolvable:$true] %s88_s26  ;;  %s114_s5 = int_to_ptr.hbm [resolvable:$true] %s113_s5 }
  0x1b   :  { %s2926_s29 = smov 64   ;;  %s2927_s30 = smov 4  }
  0x1c   :  { %94 = dma.hbm_to_vmem [thread:$0]  %s87_s25, 1024, %s89_s26, [#allocation9], %s2926_s29, %s2926_s29, %s2927_s30  }
  0x1d   :  { %s2928_s0 = smov [#allocation13]   ;;  %s135_s9 = sshll.u32 %s3595_s13, 4  ;;  %s136_s9 = int_to_ptr.hbm [resolvable:$true] %s135_s9 }
  0x1e   :  { %s115_s19 = sshll.u32 %s2928_s0, 4  ;;  %s146_s22 = sshll.u32 %s3596_s14, 4  ;;  %s116_s19 = int_to_ptr.vmem [resolvable:$true] %s115_s19  ;;  %s147_s22 = int_to_ptr.hbm [resolvable:$true] %s146_s22 }
  0x1f   :  { %118 = dma.hbm_to_vmem [thread:$0]  %s114_s5, 32, %s116_s19, [#allocation12]  }
  0x20   :  { %s2929_s11 = smov [#allocation16]   ;;  %s2930_s2 = smov [#allocation17]  }
  0x21   :  { %s137_s12 = sshll.u32 %s2929_s11, 4  ;;  %s148_s23 = sshll.u32 %s2930_s2, 4  ;;  %s138_s12 = int_to_ptr.vmem [resolvable:$true] %s137_s12  ;;  %s149_s23 = int_to_ptr.vmem [resolvable:$true] %s148_s23 }
  0x22   :  { %140 = dma.hbm_to_vmem [thread:$0]  %s136_s9, 32, %s138_s12, [#allocation15]  }
  0x23   :  { %151 = dma.hbm_to_vmem [thread:$0]  %s147_s22, 32, %s149_s23, [#allocation18]  }
  0x24   :  { %2905 = dma.done.wait [#allocation3], 64  }
  0x25   :  { %2906 = vsyncadd [#allocation3], 4294967232 }
  0x26   :  { %2907 = dma.done.wait [#allocation6], 192  }
  0x27   :  { %2908 = vsyncadd [#allocation6], 4294967104 }
  0x28   :  { %2909 = dma.done.wait [#allocation9], 1056  }
  0x29   :  { %2910 = vsyncadd [#allocation9], 4294966240 }
  0x2a   :  { %2911 = dma.done.wait [#allocation12], 64  }
  0x2b   :  { %2912 = vsyncadd [#allocation12], 4294967232 }
  0x2c   :  { %2913 = dma.done.wait [#allocation15], 64  }
  0x2d   :  { %2914 = vsyncadd [#allocation15], 4294967232 }
  0x2e   :  { %2915 = dma.done.wait [#allocation18], 32  }
  0x2f   :  { %2916 = vsyncadd [#allocation18], 4294967264  ;;  %v2931_v0 = vmov 1   ;;  %v2932_v1 = vmov 0   ;;  %v2933_v2 = vmov 2   ;;  %s3606_s24 = sld [smem:[#allocation27_spill]] }
  0x30   :  { %2510 = vset.pattern.permute.xlu1 %v2931_v0  ;;  %2509 = vset.pattern.permute.xlu0 %v2932_v1  ;;  %v2179_v5 = vld [vmem:[%s3586_s4 + $0x30] sm:$0xf]  ;;  %v2441_v6 = vld [vmem:[%s3586_s4 + $0x34] sm:$0xf0]  ;;  %v2440_v7 = vld [vmem:[%s3586_s4 + $0x34] sm:$0xf] }
  0x31   :  { %2511 = vset.pattern.permute.xlu2 %v2933_v2  ;;  %v2180_v8 = vor.u32 %v2441_v6, %v2179_v5  ;;  %v2181_v9 = vld [vmem:[%s3586_s4 + $0x38] sm:$0xf0]  ;;  %v2171_v11 = vld [vmem:[%s3586_s4 + $0x20] sm:$0xf]  ;;  %v2439_v12 = vld [vmem:[%s3586_s4 + $0x24] sm:$0xf0] }
  0x32   :  { %v2184_v10 = vor.u32 %v2440_v7, %v2181_v9  ;;  %v2438_v13 = vld [vmem:[%s3586_s4 + $0x24] sm:$0xf]  ;;  %v2172_v14 = vor.u32 %v2439_v12, %v2171_v11  ;;  %v2173_v15 = vld [vmem:[%s3586_s4 + $0x28] sm:$0xf0]  ;;  %v2163_v17 = vld [vmem:[%s3586_s4 + $0x10] sm:$0xf] }
  0x33   :  { %312 = vmatpush.bf16.msra.mxu0 %v2180_v8  ;;  %v2176_v16 = vor.u32 %v2438_v13, %v2173_v15  ;;  %v2437_v18 = vld [vmem:[%s3586_s4 + $0x14] sm:$0xf0]  ;;  %v2436_v19 = vld [vmem:[%s3586_s4 + $0x14] sm:$0xf]  ;;  %v2165_v21 = vld [vmem:[%s3586_s4 + $0x18] sm:$0xf0] }
  0x34   :  { %326 = vmatpush.bf16.msra.mxu1 %v2184_v10  ;;  %v2164_v20 = vor.u32 %v2437_v18, %v2163_v17  ;;  %v2168_v22 = vor.u32 %v2436_v19, %v2165_v21  ;;  %v2155_v23 = vld [vmem:[%s3586_s4] sm:$0xf]  ;;  %v2435_v24 = vld [vmem:[%s3586_s4 + $0x4] sm:$0xf0]  ;;  %v2434_v25 = vld [vmem:[%s3586_s4 + $0x4] sm:$0xf] }
  0x35   :  { %v199_v3 = vld [vmem:[%s3606_s24] sm:$0xff]  ;;  %v200_v4 = vld [vmem:[%s3606_s24 + $0x8] sm:$0xff]  ;;  %v2156_v26 = vor.u32 %v2435_v24, %v2155_v23  ;;  %s3607_s20 = sld [smem:[#allocation29_spill]]  ;;  %vm304_vm0 = vcmask 523264   ;;  %s2934_s21 = smov 48   ;;  %vm345_vm1 = vcmask 130048  }
  0x36   :  { %224 = vperm.xlu1 %2510, %v199_v3   ;;  %210 = vperm.xlu0 %2509, %v199_v3   ;;  %v2157_v27 = vld [vmem:[%s3586_s4 + $0x8] sm:$0xf0]  ;;  %v201_v29 = vld [vmem:[#allocation2] sm:$0x7]  ;;  %v203_v34 = vld [vmem:[#allocation5] sm:$0xff]  ;;  %s2935_s22 = smov 112  }
  0x37   :  { %237 = vperm.xlu2 %2511, %v199_v3   ;;  %313 = vmatpush.bf16.msra.mxu0 %v2172_v14  ;;  %v2160_v28 = vor.u32 %v2434_v25, %v2157_v27  ;;  %v218_v32 = vperm.slane %v201_v29, 0  ;;  %v231_v36 = vperm.slane %v201_v29, 1  ;;  %v244_v39 = vperm.slane %v201_v29, 2  ;;  %v258_v55 = vld [vmem:[#allocation7] ss:$2 sm:$0x3] }
  0x38   :  { %327 = vmatpush.bf16.msra.mxu1 %v2176_v16  ;;  %v260_v56 = vperm.slane %v258_v55, 0  ;;  %s2936_s11 = smov 96   ;;  %s2937_s12 = smov 16   ;;  %vm417_vm2 = vcmask 1043456   ;;  %vm389_vm3 = vcmask 64512   ;;  %vm821_vm4 = vcmask 261120  }
  0x39   :  { %s2938_s2 = smov 80   ;;  %s2939_s23 = smov 32   ;;  %vm824_vm5 = vcmask 392192  }
  0x3a   :  { %s2941_s28 = smov [#allocation19]   ;;  %s2138_s5 = sshll.u32 %s3600_s18, 4  ;;  %s2139_s5 = int_to_ptr.hbm [resolvable:$true] %s2138_s5 }
  0x3b   :  { %314 = vmatpush.bf16.msra.mxu0 %v2164_v20  ;;  %v2543_v31 = vld [vmem:[%s3607_s20] ss:$0 sm:$0xff] }
  0x3c   :  { %328 = vmatpush.bf16.msra.mxu1 %v2168_v22  ;;  %v207_v37 = vadd.f32 %v2543_v31, %v203_v34 }
  0x3e   :  { %228 = vperm.xlu1 %2510, %v200_v4   ;;  %215 = vperm.xlu0 %2509, %v200_v4  }
  0x3f   :  { %241 = vperm.xlu2 %2511, %v200_v4   ;;  %315 = vmatpush.bf16.msra.mxu0 %v2156_v26  ;;  %v261_v4 = vperm.slane %v258_v55, 1 }
  0x40   :  { %329 = vmatpush.bf16.msra.mxu1 %v2160_v28 }
  0x46   :  { %2542 = vset.pattern.permute.xlu0 %v2933_v2 }
  0x91   :  { %v238_v30 = vpop.permute.xlu2 %237 }
  0x92   :  { %v245_v46 = vmul.f32 %v244_v39, %v238_v30 }
  0x99   :  { %v242_v45 = vpop.permute.xlu2 %241 }
  0x9a   :  { %v246_v50 = vmul.f32 %v244_v39, %v242_v45 }
  0xa8   :  { %v225_v33 = vpop.permute.xlu1 %224  ;;  %v211_v35 = vpop.permute.xlu0 %210 }
  0xa9   :  { %v219_v38 = vmul.f32 %v218_v32, %v211_v35  ;;  %v232_v40 = vmul.f32 %v231_v36, %v225_v33 }
  0xab   :  { %v221_v41 = vadd.f32 %v219_v38, %v207_v37 }
  0xad   :  { %v234_v47 = vadd.f32 %v232_v40, %v221_v41 }
  0xaf   :  { %v3126_v52 = vadd.f32 %v245_v46, %v234_v47 }
  0xb0   :  { %v229_v42 = vpop.permute.xlu1 %228  ;;  %v216_v43 = vpop.permute.xlu0 %215 }
  0xb1   :  { %v220_v44 = vmul.f32 %v218_v32, %v216_v43  ;;  %v233_v48 = vmul.f32 %v231_v36, %v229_v42 }
  0xb3   :  { %v222_v49 = vadd.f32 %v220_v44, %v207_v37 }
  0xb5   :  { %v235_v51 = vadd.f32 %v233_v48, %v222_v49 }
  0xb7   :  { %v3128_v53 = vadd.f32 %v246_v50, %v235_v51 }
  0xb9   :  { %v249_v54 = vpack.c.bf16 %v3128_v53, %v3126_v52 }
  0xbb   :  { %2185 = vmatmul.msk.bf16.vlgmr.msra.gmra.mxu0 %vm304_vm0, %v249_v54  ;;  %2186 = vmatmul.msk.bf16.vlgmr.msra.gmra.mxu1 %vm304_vm0, %v249_v54 }
 0x138   :  { %v317_v57 = vpop.f32.mrf.mxu0  ;;  %v331_v3 = vpop.f32.mrf.mxu1 }
 0x139   :  { %v318_v58 = vadd.f32 %v317_v57, %v260_v56  ;;  %v332_v5 = vadd.f32 %v331_v3, %v261_v4 }
 0x13b   :  { %v336_v59 = vpack.c.bf16 %v318_v58, %v318_v58  ;;  %v3158_v6 = vpack.c.bf16 %v332_v5, %v332_v5 }
 0x13d   :  { %v341_v60 = vunpack.c.l.b16 %v336_v59  ;;  %v419_v11 = vsel %vm417_vm2, %v3158_v6, 0 }
 0x13f   :  { %v3134_v61 = vpack.c.b16 %v341_v60, %v341_v60 }
 0x140   :  { %v319_v62 = vpop.f32.mrf.mxu0  ;;  %v333_v7 = vpop.f32.mrf.mxu1 }
 0x141   :  { %v320_v63 = vadd.f32 %v319_v62, %v260_v56  ;;  %343 = vrot.lane.b32.xlu0 %v3134_v61, %s2926_s29  ;;  %v334_v10 = vadd.f32 %v333_v7, %v261_v4 }
 0x143   :  { %v337_v0 = vpack.c.bf16 %v320_v63, %v320_v63  ;;  %v3163_v12 = vpack.c.bf16 %v334_v10, %v334_v10 }
 0x145   :  { %v366_v1 = vunpack.c.l.b16 %v337_v0  ;;  %v438_v15 = vsel %vm417_vm2, %v3163_v12, 0 }
 0x147   :  { %v3138_v2 = vpack.c.b16 %v366_v1, %v366_v1 }
 0x149   :  { %368 = vrot.lane.b32.xlu0 %v3138_v2, %s2926_s29 }
 0x151   :  { %455 = vrot.lane.b32.xlu0 %v3134_v61, %s2934_s21 }
 0x159   :  { %478 = vrot.lane.b32.xlu0 %v3138_v2, %s2934_s21 }
 0x161   :  { %453 = vrot.lane.b32.xlu0 %v3134_v61, %s2935_s22 }
 0x169   :  { %476 = vrot.lane.b32.xlu0 %v3138_v2, %s2935_s22 }
 0x171   :  { %571 = vrot.lane.b32.xlu0 %v3134_v61, %s2936_s11 }
 0x179   :  { %594 = vrot.lane.b32.xlu0 %v3138_v2, %s2936_s11 }
 0x181   :  { %685 = vrot.lane.b32.xlu0 %v3134_v61, %s2937_s12 }
 0x189   :  { %706 = vrot.lane.b32.xlu0 %v3138_v2, %s2938_s2 }
 0x1b3   :  { %v344_v8 = vpop.permute.xlu0 %343 }
 0x1b4   :  { %v350_v9 = vsel %vm345_vm1, %v344_v8, 0 }
 0x1b5   :  { %359 = vmatpush.bf16.xpose.msra.mxu2 %v350_v9 }
 0x1bb   :  { %v369_v13 = vpop.permute.xlu0 %368 }
 0x1bc   :  { %2187 = vmatmul.msk.bf16.vlgmr.msra.gmra.mxu2 %vm345_vm1, %v336_v59  ;;  %v374_v14 = vsel %vm345_vm1, %v369_v13, 0 }
 0x1bd   :  { %428 = vmatpush.bf16.msrb.mxu2 %v419_v11  ;;  %383 = vmatpush.bf16.xpose.msra.mxu3 %v374_v14 }
 0x1c3   :  { %v456_v16 = vpop.permute.xlu0 %455 }
 0x1c4   :  { %v461_v17 = vsel %vm345_vm1, %v456_v16, 0  ;;  %2188 = vmatmul.msk.bf16.vlgmr.msra.gmra.mxu3 %vm345_vm1, %v337_v0 }
 0x1c5   :  { %447 = vmatpush.bf16.msrb.mxu3 %v438_v15  ;;  %470 = vmatpush.bf16.xpose.msra.mxu2 %v461_v17 }
 0x1cb   :  { %v479_v18 = vpop.permute.xlu0 %478 }
 0x1cc   :  { %v484_v19 = vsel %vm345_vm1, %v479_v18, 0  ;;  %v548_v18 = vunpack.c.l.b16 %v3163_v12 }
 0x1cd   :  { %493 = vmatpush.bf16.xpose.msrb.mxu1 %v484_v19 }
 0x1d3   :  { %v454_v20 = vpop.permute.xlu0 %453 }
 0x1db   :  { %v477_v21 = vpop.permute.xlu0 %476 }
 0x1dc   :  { %2192 = vmatmul.msk.bf16.vlgmr.msrb.gmra.mxu1 %vm345_vm1, %v477_v21  ;;  %v524_v21 = vunpack.c.l.b16 %v3158_v6 }
 0x1e3   :  { %v572_v35 = vpop.permute.xlu0 %571 }
 0x1eb   :  { %v595_v38 = vpop.permute.xlu0 %594 }
 0x1f3   :  { %v686_v42 = vpop.permute.xlu0 %685 }
 0x1f4   :  { %v691_v46 = vsel %vm345_vm1, %v686_v42, 0 }
 0x1fb   :  { %v707_v50 = vpop.permute.xlu0 %706 }
 0x23f   :  { %v361_v22 = vpop.f32.mrf.mxu2 }
 0x240   :  { %v390_v23 = vsel %vm389_vm3, %v361_v22, -inf }
 0x241   :  { %391 = vmax.xlane.f32.xlu1 %v390_v23 }
 0x247   :  { %v363_v24 = vpop.f32.mrf.mxu2  ;;  %v3174_v25 = vpop.f32.mrf.mxu3 }
 0x248   :  { %v393_v39 = vsel %vm389_vm3, %v3174_v25, -inf }
 0x24f   :  { %v387_v26 = vpop.f32.mrf.mxu3 }
 0x259   :  { %v495_v27 = vpop.f32.mrf.mxu1 }
 0x25a   :  { %596 = vrot.lane.b32.xlu1 %v3138_v2, %s2939_s23  ;;  %v502_v28 = vsel %vm389_vm3, %v495_v27, -inf }
 0x25b   :  { %503 = vmax.xlane.f32.xlu0 %v502_v28 }
 0x261   :  { %v497_v29 = vpop.f32.mrf.mxu1 }
 0x262   :  { %683 = vrot.lane.b32.xlu1 %v3134_v61, %s2938_s2 }
 0x2b4   :  { %v392_v30 = vpop.xlane.xlu1 %391 }
 0x2b5   :  { %v396_v31 = vsub.f32 %v361_v22, %v392_v30  ;;  %v525_v22 = vpack.c.b16 %v524_v21, %v524_v21 }
 0x2b7   :  { %v398_v32 = vmul.f32 1.442695, %v396_v31 }
 0x2b9   :  { %2559 = vpow2.f32 %v398_v32 }
 0x2bf   :  { %v2560_v33 = vpop.eup %2559 }
 0x2c0   :  { %v402_v34 = vsel %vm389_vm3, %v2560_v33, 0.0 }
 0x2c1   :  { %403 = vadd.xlane.f32.xlu2 %v402_v34 }
 0x2cc   :  { %v597_v36 = vpop.permute.xlu1 %596 }
 0x2cd   :  { %v602_v37 = vsel %vm345_vm1, %v597_v36, 0 }
 0x2ce   :  { %611 = vmatpush.bf16.xpose.msra.mxu1 %v602_v37  ;;  %v504_v56 = vpop.xlane.xlu0 %503 }
 0x2cf   :  { %v506_v57 = vsub.f32 %v495_v27, %v504_v56 }
 0x2d4   :  { %v684_v54 = vpop.permute.xlu1 %683 }
 0x2d5   :  { %2196 = vmatmul.msk.bf16.vlgmr.msra.gmra.mxu1 %vm345_vm1, %v595_v38 }
 0x2d9   :  { %573 = vrot.lane.b32.xlu2 %v3134_v61, %s2939_s23  ;;  %v509_v61 = vmul.f32 1.442695, %v506_v57 }
 0x2e1   :  { %708 = vrot.lane.b32.xlu2 %v3138_v2, %s2937_s12 }
 0x30a   :  { %394 = vmax.xlane.f32.xlu2 %v393_v39 }
 0x334   :  { %v404_v40 = vpop.xlane.xlu2 %403 }
 0x335   :  { %2561 = vrcp.f32 %v404_v40 }
 0x336   :  { %2563 = vpow2.f32 %v509_v61 }
 0x33b   :  { %v2562_v41 = vpop.eup %2561 }
 0x33c   :  { %v410_v43 = vmul.f32 %v2562_v41, %v2560_v33  ;;  %v574_v44 = vpop.permute.xlu2 %573  ;;  %v3207_v2 = vpop.eup %2563 }
 0x33d   :  { %v579_v45 = vsel %vm345_vm1, %v574_v44, 0  ;;  %v514_v10 = vsel %vm389_vm3, %v3207_v2, 0.0 }
 0x33e   :  { %588 = vmatpush.bf16.xpose.msrb.mxu0 %v579_v45  ;;  %v412_v47 = vpack.c.bf16 %v410_v43, %v410_v43 }
 0x340   :  { %2189 = vmatmul.msk.bf16.vlgmr.msrb.gmra.mxu2 %vm389_vm3, %v412_v47 }
 0x344   :  { %v709_v48 = vpop.permute.xlu2 %708 }
 0x345   :  { %v714_v49 = vsel %vm345_vm1, %v709_v48, 0  ;;  %2195 = vmatmul.msk.bf16.vlgmr.msrb.gmra.mxu0 %vm345_vm1, %v572_v35 }
 0x346   :  { %700 = vmatpush.bf16.xpose.msra.mxu0 %v691_v46  ;;  %723 = vmatpush.bf16.xpose.msrb.mxu1 %v714_v49 }
 0x34d   :  { %2200 = vmatmul.msk.bf16.vlgmr.msrb.gmra.mxu1 %vm345_vm1, %v707_v50 }
 0x350   :  { %2191 = vmatmul.msk.bf16.vlgmr.msra.gmra.mxu2 %vm345_vm1, %v454_v20  ;;  %v549_v20 = vpack.c.b16 %v548_v18, %v548_v18 }
 0x352   :  { %v3197_v51 = vpop.f32.mrf.mxu1 }
 0x353   :  { %v620_v16 = vsel %vm389_vm3, %v3197_v51, -inf }
 0x355   :  { %2199 = vmatmul.msk.bf16.vlgmr.msra.gmra.mxu0 %vm345_vm1, %v684_v54 }
 0x35a   :  { %v615_v55 = vpop.f32.mrf.mxu1 }
 0x37d   :  { %v395_v3 = vpop.xlane.xlu2 %394 }
 0x37e   :  { %v397_v7 = vsub.f32 %v3174_v25, %v395_v3 }
 0x380   :  { %v400_v13 = vmul.f32 1.442695, %v397_v7 }
 0x382   :  { %2565 = vpow2.f32 %v400_v13 }
 0x388   :  { %v2566_v17 = vpop.eup %2565 }
 0x389   :  { %v405_v19 = vsel %vm389_vm3, %v2566_v17, 0.0 }
 0x3c2   :  { %v590_v58 = vpop.f32.mrf.mxu0 }
 0x3c3   :  { %v3200_v59 = vpop.f32.mrf.mxu2  ;;  %v617_v60 = vsel %vm389_vm3, %v590_v58, -inf }
 0x3c4   :  { %618 = vmax.xlane.f32.xlu2 %v617_v60 }
 0x3ca   :  { %v592_v62 = vpop.f32.mrf.mxu0  ;;  %v3203_v63 = vpop.f32.mrf.mxu1 }
 0x3cb   :  { %v432_v0 = vpop.f32.mrf.mxu2  ;;  %v732_v1 = vsel %vm389_vm3, %v3203_v63, -inf }
 0x3cc   :  { %733 = vmax.xlane.f32.xlu2 %v732_v1 }
 0x3d2   :  { %v702_v4 = vpop.f32.mrf.mxu0  ;;  %v727_v5 = vpop.f32.mrf.mxu1 }
 0x3d3   :  { %v472_v8 = vpop.f32.mrf.mxu2  ;;  %v729_v9 = vsel %vm389_vm3, %v702_v4, -inf }
 0x3d4   :  { %730 = vmax.xlane.f32.xlu0 %v729_v9  ;;  %515 = vadd.xlane.f32.xlu2 %v514_v10  ;;  %v499_v11 = vsel %vm389_vm3, %v472_v8, -inf }
 0x3d5   :  { %500 = vmax.xlane.f32.xlu1 %v499_v11 }
 0x3da   :  { %v704_v14 = vpop.f32.mrf.mxu0 }
 0x3db   :  { %v474_v15 = vpop.f32.mrf.mxu2 }
 0x3dd   :  { %621 = vmax.xlane.f32.xlu1 %v620_v16 }
 0x3e5   :  { %406 = vadd.xlane.f32.xlu1 %v405_v19 }
 0x3e8   :  { %550 = vrot.lane.b32.xlu0 %v549_v20, %s2935_s22 }
 0x3fe   :  { %526 = vrot.lane.b32.xlu1 %v525_v22, %s2935_s22 }
 0x437   :  { %v619_v23 = vpop.xlane.xlu2 %618 }
 0x438   :  { %v623_v24 = vsub.f32 %v590_v58, %v619_v23 }
 0x43a   :  { %v625_v25 = vmul.f32 1.442695, %v623_v24 }
 0x43c   :  { %2567 = vpow2.f32 %v625_v25 }
 0x43f   :  { %v734_v39 = vpop.xlane.xlu2 %733 }
 0x440   :  { %v736_v56 = vsub.f32 %v3203_v63, %v734_v39 }
 0x442   :  { %v3221_v26 = vpop.eup %2567  ;;  %v739_v57 = vmul.f32 1.442695, %v736_v56 }
 0x443   :  { %v629_v12 = vsel %vm389_vm3, %v3221_v26, 0.0 }
 0x444   :  { %630 = vadd.xlane.f32.xlu2 %v629_v12 }
 0x447   :  { %v731_v27 = vpop.xlane.xlu0 %730  ;;  %v516_v47 = vpop.xlane.xlu2 %515 }
 0x448   :  { %v735_v28 = vsub.f32 %v702_v4, %v731_v27  ;;  %v501_v29 = vpop.xlane.xlu1 %500 }
 0x449   :  { %v505_v30 = vsub.f32 %v472_v8, %v501_v29 }
 0x44a   :  { %v737_v31 = vmul.f32 1.442695, %v735_v28 }
 0x44b   :  { %v507_v32 = vmul.f32 1.442695, %v505_v30 }
 0x44c   :  { %2569 = vpow2.f32 %v737_v31 }
 0x44d   :  { %2571 = vpow2.f32 %v507_v32 }
 0x450   :  { %v622_v6 = vpop.xlane.xlu1 %621 }
 0x451   :  { %v624_v33 = vsub.f32 %v3197_v51, %v622_v6 }
 0x452   :  { %v3226_v34 = vpop.eup %2569 }
 0x453   :  { %v2572_v35 = vpop.eup %2571  ;;  %v627_v36 = vmul.f32 1.442695, %v624_v33  ;;  %v741_v37 = vsel %vm389_vm3, %v3226_v34, 0.0 }
 0x454   :  { %742 = vadd.xlane.f32.xlu1 %v741_v37  ;;  %v511_v38 = vsel %vm389_vm3, %v2572_v35, 0.0 }
 0x455   :  { %2573 = vpow2.f32 %v627_v36  ;;  %512 = vadd.xlane.f32.xlu0 %v511_v38 }
 0x458   :  { %v407_v40 = vpop.xlane.xlu1 %406 }
 0x459   :  { %2575 = vrcp.f32 %v407_v40 }
 0x45a   :  { %v551_v41 = vpop.permute.xlu0 %550  ;;  %2577 = vrcp.f32 %v516_v47 }
 0x45b   :  { %v2574_v42 = vpop.eup %2573  ;;  %v556_v43 = vsel %vm417_vm2, %v551_v41, 0  ;;  %2579 = vpow2.f32 %v739_v57 }
 0x45c   :  { %565 = vmatpush.bf16.msra.mxu3 %v556_v43  ;;  %v632_v44 = vsel %vm389_vm3, %v2574_v42, 0.0  ;;  %v2444_v43 = vld [vmem:[%s3588_s6 + $0x10] sm:$0xff] }
 0x45d   :  { %633 = vadd.xlane.f32.xlu2 %v632_v44  ;;  %v2443_v44 = vld [vmem:[%s3588_s6 + $0x8] sm:$0xff] }
 0x45f   :  { %v2576_v45 = vpop.eup %2575 }
 0x460   :  { %v411_v46 = vmul.f32 %v2576_v45, %v2566_v17  ;;  %v2578_v49 = vpop.eup %2577  ;;  %v2442_v45 = vld [vmem:[%s3588_s6] sm:$0xff] }
 0x461   :  { %v520_v50 = vmul.f32 %v2578_v49, %v3207_v2  ;;  %v2580_v58 = vpop.eup %2579 }
 0x462   :  { %v413_v48 = vpack.c.bf16 %v411_v46, %v411_v46  ;;  %v744_v60 = vsel %vm389_vm3, %v2580_v58, 0.0 }
 0x463   :  { %v522_v55 = vpack.c.bf16 %v520_v50, %v520_v50 }
 0x464   :  { %2190 = vmatmul.msk.bf16.vlgmr.msrb.gmra.mxu3 %vm389_vm3, %v413_v48 }
 0x469   :  { %662 = vrot.lane.b32.xlu0 %v549_v20, %s2936_s11 }
 0x470   :  { %v527_v51 = vpop.permute.xlu1 %526 }
 0x471   :  { %v532_v54 = vsel %vm417_vm2, %v527_v51, 0 }
 0x472   :  { %541 = vmatpush.bf16.msrb.mxu2 %v532_v54 }
 0x474   :  { %2194 = vmatmul.msk.bf16.vlgmr.msra.gmra.mxu3 %vm389_vm3, %v522_v55 }
 0x475   :  { %641 = vrot.lane.b32.xlu2 %v525_v22, %s2936_s11 }
 0x47d   :  { %753 = vrot.lane.b32.xlu2 %v525_v22, %s2938_s2 }
 0x485   :  { %774 = vrot.lane.b32.xlu2 %v549_v20, %s2938_s2 }
 0x493   :  { %745 = vadd.xlane.f32.xlu0 %v744_v60 }
 0x4b7   :  { %v631_v61 = vpop.xlane.xlu2 %630 }
 0x4c7   :  { %v743_v17 = vpop.xlane.xlu1 %742 }
 0x4c8   :  { %v513_v62 = vpop.xlane.xlu0 %512 }
 0x4c9   :  { %2581 = vrcp.f32 %v513_v62 }
 0x4cf   :  { %v2582_v0 = vpop.eup %2581 }
 0x4d0   :  { %v519_v1 = vmul.f32 %v2582_v0, %v2572_v35  ;;  %v634_v2 = vpop.xlane.xlu2 %633 }
 0x4d1   :  { %2583 = vrcp.f32 %v634_v2  ;;  %v2544_v2 = vld [vmem:[#allocation8] ss:$0 sm:$0xff] }
 0x4d2   :  { %v521_v3 = vpack.c.bf16 %v519_v1, %v519_v1  ;;  %2585 = vrcp.f32 %v631_v61 }
 0x4d3   :  { %2587 = vrcp.f32 %v743_v17 }
 0x4d4   :  { %2193 = vmatmul.msk.bf16.vlgmr.msrb.gmra.mxu2 %vm389_vm3, %v521_v3 }
 0x4d7   :  { %v2584_v63 = vpop.eup %2583 }
 0x4d8   :  { %v642_v4 = vpop.permute.xlu2 %641  ;;  %v638_v7 = vmul.f32 %v2584_v63, %v2574_v42  ;;  %v2586_v8 = vpop.eup %2585  ;;  %v2445_v42 = vld [vmem:[%s3588_s6 + $0x18] sm:$0xff] }
 0x4d9   :  { %v647_v5 = vsel %vm417_vm2, %v642_v4, 0  ;;  %v637_v11 = vmul.f32 %v2586_v8, %v3221_v26  ;;  %v2588_v21 = vpop.eup %2587  ;;  %869 = vmatpush.bf16.msrb.mxu0 %v2445_v42 }
 0x4da   :  { %656 = vmatpush.bf16.msra.mxu2 %v647_v5  ;;  %v640_v13 = vpack.c.bf16 %v638_v7, %v638_v7  ;;  %v749_v22 = vmul.f32 %v2588_v21, %v3226_v34 }
 0x4db   :  { %v663_v9 = vpop.permute.xlu0 %662  ;;  %v639_v16 = vpack.c.bf16 %v637_v11, %v637_v11 }
 0x4dc   :  { %v668_v10 = vsel %vm417_vm2, %v663_v9, 0  ;;  %v751_v24 = vpack.c.bf16 %v749_v22, %v749_v22 }
 0x4dd   :  { %677 = vmatpush.bf16.msrb.mxu3 %v668_v10  ;;  %870 = vmatpush.bf16.msrb.mxu0 %v2444_v43  ;;  %v2940_v10 = vmov 64.0  }
 0x4e0   :  { %v754_v14 = vpop.permute.xlu2 %753  ;;  %2198 = vmatmul.msk.bf16.vlgmr.msrb.gmra.mxu3 %vm389_vm3, %v640_v13 }
 0x4e1   :  { %v759_v15 = vsel %vm417_vm2, %v754_v14, 0  ;;  %871 = vmatpush.bf16.msrb.mxu0 %v2443_v44 }
 0x4e2   :  { %768 = vmatpush.bf16.msrb.mxu2 %v759_v15 }
 0x4e4   :  { %2197 = vmatmul.msk.bf16.vlgmr.msra.gmra.mxu2 %vm389_vm3, %v639_v16 }
 0x4e5   :  { %872 = vmatpush.bf16.msrb.mxu0 %v2442_v45 }
 0x4e7   :  { %v449_v18 = vpop.f32.mrf.mxu3 }
 0x4e8   :  { %v775_v19 = vpop.permute.xlu2 %774 }
 0x4e9   :  { %v780_v20 = vsel %vm417_vm2, %v775_v19, 0 }
 0x4ea   :  { %789 = vmatpush.bf16.msra.mxu3 %v780_v20 }
 0x4ef   :  { %v451_v23 = vpop.f32.mrf.mxu3 }
 0x4f4   :  { %2201 = vmatmul.msk.bf16.vlgmr.msrb.gmra.mxu2 %vm389_vm3, %v751_v24 }
 0x4f7   :  { %v567_v25 = vpop.f32.mrf.mxu3 }
 0x4ff   :  { %v569_v26 = vpop.f32.mrf.mxu3 }
 0x500   :  { %v2449_v26 = vld [vmem:[#allocation10 + $0x18] sm:$0xff] }
 0x501   :  { %982 = vmatpush.bf16.msra.mxu1 %v2449_v26 }
 0x506   :  { %v746_v12 = vpop.xlane.xlu0 %745 }
 0x507   :  { %2589 = vrcp.f32 %v746_v12  ;;  %v2448_v12 = vld [vmem:[#allocation10 + $0x10] sm:$0xff] }
 0x508   :  { %2591 = vrcp.f32 %v2940_v10  ;;  %983 = vmatpush.bf16.msra.mxu1 %v2448_v12 }
 0x50d   :  { %v2590_v27 = vpop.eup %2589 }
 0x50e   :  { %v750_v28 = vmul.f32 %v2590_v27, %v2580_v58  ;;  %v2592_v11 = vpop.eup %2591  ;;  %v2447_v27 = vld [vmem:[#allocation10 + $0x8] sm:$0xff] }
 0x50f   :  { %v890_v13 = vmul.f32 64.0, %v2592_v11  ;;  %vm894_vm6 = vweird.f32 %v2592_v11  ;;  %984 = vmatpush.bf16.msra.mxu1 %v2447_v27 }
 0x510   :  { %v752_v29 = vpack.c.bf16 %v750_v28, %v750_v28 }
 0x511   :  { %v891_v14 = vsub.f32 1.0, %v890_v13  ;;  %v2548_v13 = vld [vmem:[#allocation13] ss:$0 sm:$0xff] }
 0x512   :  { %2202 = vmatmul.msk.bf16.vlgmr.msra.gmra.mxu3 %vm389_vm3, %v752_v29 }
 0x513   :  { %v892_v15 = vmul.f32 %v2592_v11, %v891_v14 }
 0x515   :  { %v893_v16 = vadd.f32 %v2592_v11, %v892_v15 }
 0x517   :  { %v3281_v17 = vsel %vm894_vm6, %v2592_v11, %v893_v16 }
 0x557   :  { %v543_v30 = vpop.f32.mrf.mxu2 }
 0x558   :  { %v2512_v31 = vpack.i.bf16 %v567_v25, %v543_v30  ;;  %v2446_v30 = vld [vmem:[#allocation10] sm:$0xff] }
 0x559   :  { %985 = vmatpush.bf16.msra.mxu1 %v2446_v30  ;;  %v2303_v30 = vld [vmem:[%s3586_s4 + $0x70] sm:$0xf] }
 0x55a   :  { %2513 = vrot.lane.b32.xlu2 %v2512_v31, %s2937_s12 }
 0x55f   :  { %v545_v32 = vpop.f32.mrf.mxu2 }
 0x560   :  { %v2457_v32 = vld [vmem:[%s3592_s10 + $0x38] sm:$0xff] }
 0x561   :  { %1061 = vmatpush.bf16.msra.mxu2 %v2457_v32  ;;  %v2464_v32 = vld [vmem:[%s3586_s4 + $0x74] sm:$0xf] }
 0x563   :  { %v679_v6 = vpop.f32.mrf.mxu3 }
 0x567   :  { %v658_v33 = vpop.f32.mrf.mxu2 }
 0x568   :  { %v2517_v34 = vpack.i.bf16 %v679_v6, %v658_v33 }
 0x56a   :  { %2518 = vrot.lane.b32.xlu1 %v2517_v34, %s2939_s23  ;;  %v2456_v34 = vld [vmem:[%s3592_s10 + $0x30] sm:$0xff] }
 0x56b   :  { %v681_v35 = vpop.f32.mrf.mxu3  ;;  %1062 = vmatpush.bf16.msra.mxu2 %v2456_v34 }
 0x56f   :  { %v660_v36 = vpop.f32.mrf.mxu2 }
 0x577   :  { %v770_v37 = vpop.f32.mrf.mxu2 }
 0x57f   :  { %v772_v38 = vpop.f32.mrf.mxu2 }
 0x580   :  { %v2455_v38 = vld [vmem:[%s3592_s10 + $0x28] sm:$0xff] }
 0x581   :  { %1063 = vmatpush.bf16.msra.mxu2 %v2455_v38 }
 0x595   :  { %v791_v39 = vpop.f32.mrf.mxu3 }
 0x596   :  { %v2522_v40 = vpack.i.bf16 %v791_v39, %v770_v37 }
 0x598   :  { %2523 = vrot.lane.b32.xlu2 %v2522_v40, %s2934_s21 }
 0x59d   :  { %v793_v41 = vpop.f32.mrf.mxu3 }
 0x59e   :  { %v2454_v41 = vld [vmem:[%s3592_s10 + $0x20] sm:$0xff] }
 0x59f   :  { %1064 = vmatpush.bf16.msra.mxu2 %v2454_v41  ;;  %v2287_v41 = vld [vmem:[%s3586_s4 + $0x50] sm:$0xf] }
 0x5b4   :  { %v2514_v46 = vpop.permute.xlu2 %2513 }
 0x5b5   :  { %v2516_v48 = vunpack.i.h.bf16 %v2514_v46  ;;  %v2515_v49 = vunpack.i.l.bf16 %v2514_v46 }
 0x5b7   :  { %v820_v55 = vsel %vm345_vm1, %v449_v18, %v2516_v48  ;;  %v819_v56 = vsel %vm345_vm1, %v3200_v59, %v2515_v49 }
 0x5dc   :  { %v2519_v47 = vpop.permute.xlu1 %2518 }
 0x5dd   :  { %v2521_v50 = vunpack.i.h.bf16 %v2519_v47  ;;  %v2520_v51 = vunpack.i.l.bf16 %v2519_v47 }
 0x5df   :  { %v823_v60 = vsel %vm821_vm4, %v820_v55, %v2521_v50  ;;  %v822_v61 = vsel %vm821_vm4, %v819_v56, %v2520_v51  ;;  %v2545_v50 = vld [vmem:[#allocation14] ss:$0 sm:$0xff]  ;;  %v2546_v56 = vld [vmem:[#allocation16] ss:$0 sm:$0xff] }
 0x5f2   :  { %v2524_v54 = vpop.permute.xlu2 %2523 }
 0x5f3   :  { %v2526_v57 = vunpack.i.h.bf16 %v2524_v54  ;;  %v2525_v58 = vunpack.i.l.bf16 %v2524_v54 }
 0x5f5   :  { %v826_v62 = vsel %vm824_vm5, %v823_v60, %v2526_v57  ;;  %v825_v0 = vsel %vm824_vm5, %v822_v61, %v2525_v58 }
 0x5f6   :  { %v827_v1 = vpack.c.bf16 %v826_v62, %v825_v0 }
 0x5f8   :  { %2219 = vmatmul.msk.bf16.vlgmr.msrb.gmra.mxu0 %vm304_vm0, %v827_v1  ;;  %v2453_v1 = vld [vmem:[%s3592_s10 + $0x18] sm:$0xff] }
 0x5f9   :  { %1065 = vmatpush.bf16.msra.mxu2 %v2453_v1 }
 0x675   :  { %v874_v3 = vpop.f32.mrf.mxu0 }
 0x676   :  { %v875_v63 = vadd.f32 %v2544_v2, %v874_v3  ;;  %v2451_v3 = vld [vmem:[%s3592_s10 + $0x8] sm:$0xff] }
 0x678   :  { %v879_v4 = vadd.f32 %v875_v63, %v3126_v52  ;;  %v2450_v63 = vld [vmem:[%s3592_s10] sm:$0xff] }
 0x67a   :  { %v883_v59 = vsel %vm304_vm0, %v879_v4, 0.0 }
 0x67b   :  { %884 = vadd.xlane.f32.xlu0 %v883_v59  ;;  %v2547_v59 = vld [vmem:[#allocation11] ss:$0 sm:$0xff] }
 0x67d   :  { %v876_v5 = vpop.f32.mrf.mxu0 }
 0x67e   :  { %v877_v7 = vadd.f32 %v2544_v2, %v876_v5  ;;  %v2452_v2 = vld [vmem:[%s3592_s10 + $0x10] sm:$0xff] }
 0x67f   :  { %1066 = vmatpush.bf16.msra.mxu2 %v2452_v2 }
 0x680   :  { %v880_v8 = vadd.f32 %v877_v7, %v3128_v53 }
 0x682   :  { %v886_v9 = vsel %vm304_vm0, %v880_v8, 0.0 }
 0x683   :  { %887 = vadd.xlane.f32.xlu2 %v886_v9  ;;  %1067 = vmatpush.bf16.msra.mxu2 %v2451_v3 }
 0x687   :  { %1068 = vmatpush.bf16.msra.mxu2 %v2450_v63 }
 0x6ee   :  { %v885_v52 = vpop.xlane.xlu0 %884 }
 0x6ef   :  { %v896_v18 = vmul.f32 %v3281_v17, %v885_v52 }
 0x6f1   :  { %v898_v19 = vsub.f32 %v879_v4, %v896_v18 }
 0x6f3   :  { %v900_v20 = vmul.f32 %v898_v19, %v898_v19 }
 0x6f5   :  { %v902_v53 = vsel %vm304_vm0, %v900_v20, 0.0 }
 0x6f6   :  { %v888_v21 = vpop.xlane.xlu2 %887  ;;  %903 = vadd.xlane.f32.xlu0 %v902_v53 }
 0x6f7   :  { %v897_v22 = vmul.f32 %v3281_v17, %v888_v21 }
 0x6f9   :  { %v899_v23 = vsub.f32 %v880_v8, %v897_v22 }
 0x6fb   :  { %v901_v24 = vmul.f32 %v899_v23, %v899_v23 }
 0x6fd   :  { %v905_v25 = vsel %vm304_vm0, %v901_v24, 0.0 }
 0x6fe   :  { %906 = vadd.xlane.f32.xlu0 %v905_v25 }
 0x769   :  { %v904_v28 = vpop.xlane.xlu0 %903 }
 0x76a   :  { %v908_v29 = vmul.f32 %v904_v28, %v3281_v17 }
 0x76c   :  { %v910_v31 = vadd.f32 1e-05, %v908_v29 }
 0x76e   :  { %2593 = vrsqrt.f32 %v910_v31  ;;  %vm918_vm8 = vweird.f32 %v910_v31 }
 0x771   :  { %v907_v6 = vpop.xlane.xlu0 %906 }
 0x772   :  { %v909_v33 = vmul.f32 %v907_v6, %v3281_v17 }
 0x774   :  { %v2594_v35 = vpop.eup %2593  ;;  %v911_v36 = vadd.f32 1e-05, %v909_v33  ;;  %v2305_v33 = vld [vmem:[%s3586_s4 + $0x78] sm:$0xf0] }
 0x775   :  { %v913_v37 = vmul.f32 %v2594_v35, %v910_v31  ;;  %vm919_vm7 = vweird.f32 %v2594_v35  ;;  %v2465_v31 = vld [vmem:[%s3586_s4 + $0x74] sm:$0xf0]  ;;  %v2308_v34 = vor.u32 %v2464_v32, %v2305_v33 }
 0x776   :  { %2595 = vrsqrt.f32 %v911_v36  ;;  %vm920_vm9 = vmor %vm918_vm8, %vm919_vm7  ;;  %vm928_vm11 = vweird.f32 %v911_v36  ;;  %v2304_v6 = vor.u32 %v2465_v31, %v2303_v30 }
 0x777   :  { %v914_v39 = vmul.f32 %v2594_v35, %v913_v37  ;;  %1207 = vmatpush.bf16.msra.mxu0 %v2308_v34  ;;  %v2462_v37 = vld [vmem:[%s3586_s4 + $0x64] sm:$0xf] }
 0x778   :  { %1193 = vmatpush.bf16.msrb.mxu3 %v2304_v6 }
 0x779   :  { %v915_v40 = vmul.f32 0.5, %v914_v39  ;;  %v2297_v39 = vld [vmem:[%s3586_s4 + $0x68] sm:$0xf0] }
 0x77b   :  { %v916_v42 = vsub.f32 1.5, %v915_v40  ;;  %v2300_v40 = vor.u32 %v2462_v37, %v2297_v39 }
 0x77c   :  { %v2596_v43 = vpop.eup %2595 }
 0x77d   :  { %v917_v44 = vmul.f32 %v2594_v35, %v916_v42  ;;  %v923_v45 = vmul.f32 %v2596_v43, %v911_v36  ;;  %vm929_vm10 = vweird.f32 %v2596_v43  ;;  %v2463_v36 = vld [vmem:[%s3586_s4 + $0x64] sm:$0xf0]  ;;  %1208 = vmatpush.bf16.msra.mxu0 %v2300_v40  ;;  %v2461_v42 = vld [vmem:[%s3586_s4 + $0x54] sm:$0xf0] }
 0x77e   :  { %vm930_vm12 = vmor %vm928_vm11, %vm929_vm10 }
 0x77f   :  { %v924_v46 = vmul.f32 %v2596_v43, %v923_v45  ;;  %v921_v47 = vsel %vm920_vm9, %v2594_v35, %v917_v44  ;;  %v2295_v35 = vld [vmem:[%s3586_s4 + $0x60] sm:$0xf]  ;;  %v2288_v44 = vor.u32 %v2461_v42, %v2287_v41  ;;  %v2289_v45 = vld [vmem:[%s3586_s4 + $0x58] sm:$0xf0] }
 0x780   :  { %v932_v51 = vmul.f32 %v921_v47, %v898_v19  ;;  %v2296_v38 = vor.u32 %v2463_v36, %v2295_v35 }
 0x781   :  { %v925_v48 = vmul.f32 0.5, %v924_v46 }
 0x782   :  { %v935_v57 = vmul.f32 %v2545_v50, %v932_v51  ;;  %1194 = vmatpush.bf16.msrb.mxu3 %v2296_v38  ;;  %v2458_v51 = vld [vmem:[%s3586_s4 + $0x44] sm:$0xf] }
 0x783   :  { %v926_v49 = vsub.f32 1.5, %v925_v48 }
 0x784   :  { %v938_v61 = vadd.f32 %v2546_v56, %v935_v57 }
 0x785   :  { %v927_v54 = vmul.f32 %v2596_v43, %v926_v49  ;;  %v2279_v49 = vld [vmem:[%s3586_s4 + $0x40] sm:$0xf] }
 0x786   :  { %1195 = vmatpush.bf16.msrb.mxu3 %v2288_v44 }
 0x787   :  { %v931_v55 = vsel %vm930_vm12, %v2596_v43, %v927_v54  ;;  %v2460_v43 = vld [vmem:[%s3586_s4 + $0x54] sm:$0xf] }
 0x788   :  { %v933_v58 = vmul.f32 %v931_v55, %v899_v23  ;;  %v2292_v46 = vor.u32 %v2460_v43, %v2289_v45  ;;  %v2281_v55 = vld [vmem:[%s3586_s4 + $0x48] sm:$0xf0] }
 0x789   :  { %v2284_v57 = vor.u32 %v2458_v51, %v2281_v55 }
 0x78a   :  { %v936_v60 = vmul.f32 %v2545_v50, %v933_v58  ;;  %1209 = vmatpush.bf16.msra.mxu0 %v2292_v46  ;;  %v2459_v50 = vld [vmem:[%s3586_s4 + $0x44] sm:$0xf0] }
 0x78b   :  { %v2280_v54 = vor.u32 %v2459_v50, %v2279_v49 }
 0x78c   :  { %v939_v62 = vadd.f32 %v2546_v56, %v936_v60 }
 0x78d   :  { %1196 = vmatpush.bf16.msrb.mxu3 %v2280_v54 }
 0x78e   :  { %v940_v0 = vpack.c.bf16 %v939_v62, %v938_v61  ;;  %1210 = vmatpush.bf16.msra.mxu0 %v2284_v57 }
 0x790   :  { %2236 = vmatmul.msk.bf16.vlgmr.msra.gmra.mxu1 %vm304_vm0, %v940_v0 }
 0x80d   :  { %v987_v4 = vpop.f32.mrf.mxu1 }
 0x80e   :  { %v988_v5 = vadd.f32 %v2547_v59, %v987_v4 }
 0x810   :  { %v992_v9 = vmax.f32 %v988_v5, 0.0 }
 0x815   :  { %v989_v7 = vpop.f32.mrf.mxu1 }
 0x816   :  { %v990_v8 = vadd.f32 %v2547_v59, %v989_v7 }
 0x818   :  { %v993_v10 = vmax.f32 %v990_v8, 0.0 }
 0x81a   :  { %v994_v11 = vpack.c.bf16 %v993_v10, %v992_v9  ;;  %v2549_v10 = vld [vmem:[#allocation17] ss:$0 sm:$0xff] }
 0x81c   :  { %1069 = vmatmul.bf16.vlgmr.msra.gmra.mxu2 %v994_v11 }
 0x89f   :  { %v1070_v14 = vpop.f32.mrf.mxu2 }
 0x8a0   :  { %v1071_v15 = vadd.f32 %v2548_v13, %v1070_v14 }
 0x8a2   :  { %v1075_v16 = vadd.f32 %v1071_v15, %v938_v61  ;;  %v2550_v15 = vld [vmem:[%s3597_s15] ss:$0 sm:$0xff] }
 0x8a4   :  { %v1079_v52 = vsel %vm304_vm0, %v1075_v16, 0.0 }
 0x8a5   :  { %1080 = vadd.xlane.f32.xlu1 %v1079_v52 }
 0x8a7   :  { %v1072_v18 = vpop.f32.mrf.mxu2 }
 0x8a8   :  { %v1073_v19 = vadd.f32 %v2548_v13, %v1072_v18 }
 0x8aa   :  { %v1076_v20 = vadd.f32 %v1073_v19, %v939_v62 }
 0x8ac   :  { %v1082_v53 = vsel %vm304_vm0, %v1076_v20, 0.0 }
 0x8ad   :  { %1083 = vadd.xlane.f32.xlu0 %v1082_v53 }
 0x918   :  { %v1081_v21 = vpop.xlane.xlu1 %1080 }
 0x919   :  { %v1085_v22 = vmul.f32 %v1081_v21, %v3281_v17  ;;  %v1140_v21 = vld [vmem:[#allocation7 + $0x1] ss:$2 sm:$0x3] }
 0x91b   :  { %v3317_v23 = vsub.f32 %v1075_v16, %v1085_v22  ;;  %v1143_v22 = vperm.slane %v1140_v21, 1 }
 0x91d   :  { %v1089_v24 = vmul.f32 %v3317_v23, %v3317_v23 }
 0x91f   :  { %v1091_v25 = vsel %vm304_vm0, %v1089_v24, 0.0 }
 0x920   :  { %v1084_v26 = vpop.xlane.xlu0 %1083  ;;  %1092 = vadd.xlane.f32.xlu0 %v1091_v25 }
 0x921   :  { %v1086_v12 = vmul.f32 %v1084_v26, %v3281_v17  ;;  %v1142_v26 = vperm.slane %v1140_v21, 0 }
 0x923   :  { %v3323_v27 = vsub.f32 %v1076_v20, %v1086_v12 }
 0x925   :  { %v1090_v28 = vmul.f32 %v3323_v27, %v3323_v27 }
 0x927   :  { %v1094_v29 = vsel %vm304_vm0, %v1090_v28, 0.0 }
 0x928   :  { %1095 = vadd.xlane.f32.xlu0 %v1094_v29 }
 0x993   :  { %v1093_v47 = vpop.xlane.xlu0 %1092 }
 0x994   :  { %v1097_v48 = vmul.f32 %v1093_v47, %v3281_v17 }
 0x996   :  { %v1099_v56 = vadd.f32 1e-05, %v1097_v48 }
 0x998   :  { %2597 = vrsqrt.f32 %v1099_v56  ;;  %vm1107_vm14 = vweird.f32 %v1099_v56 }
 0x99b   :  { %v1096_v58 = vpop.xlane.xlu0 %1095 }
 0x99c   :  { %v1098_v60 = vmul.f32 %v1096_v58, %v3281_v17 }
 0x99e   :  { %v2598_v61 = vpop.eup %2597  ;;  %v1100_v62 = vadd.f32 1e-05, %v1098_v60 }
 0x99f   :  { %v1102_v0 = vmul.f32 %v2598_v61, %v1099_v56  ;;  %vm1108_vm13 = vweird.f32 %v2598_v61 }
 0x9a0   :  { %2599 = vrsqrt.f32 %v1100_v62  ;;  %vm1109_vm15 = vmor %vm1107_vm14, %vm1108_vm13  ;;  %vm1117_vm7 = vweird.f32 %v1100_v62 }
 0x9a1   :  { %v1103_v1 = vmul.f32 %v2598_v61, %v1102_v0 }
 0x9a3   :  { %v1104_v2 = vmul.f32 0.5, %v1103_v1 }
 0x9a5   :  { %v1105_v3 = vsub.f32 1.5, %v1104_v2 }
 0x9a6   :  { %v2600_v63 = vpop.eup %2599 }
 0x9a7   :  { %v1106_v4 = vmul.f32 %v2598_v61, %v1105_v3  ;;  %v1112_v59 = vmul.f32 %v2600_v63, %v1100_v62  ;;  %vm1118_vm6 = vweird.f32 %v2600_v63 }
 0x9a8   :  { %vm1119_vm8 = vmor %vm1117_vm7, %vm1118_vm6 }
 0x9a9   :  { %v1113_v5 = vmul.f32 %v2600_v63, %v1112_v59  ;;  %v1110_v7 = vsel %vm1109_vm15, %v2598_v61, %v1106_v4 }
 0x9aa   :  { %v1121_v11 = vmul.f32 %v1110_v7, %v3317_v23 }
 0x9ab   :  { %v1114_v8 = vmul.f32 0.5, %v1113_v5 }
 0x9ac   :  { %v1124_v16 = vmul.f32 %v2549_v10, %v1121_v11 }
 0x9ad   :  { %v1115_v9 = vsub.f32 1.5, %v1114_v8 }
 0x9ae   :  { %v3383_v19 = vadd.f32 %v2550_v15, %v1124_v16 }
 0x9af   :  { %v1116_v13 = vmul.f32 %v2600_v63, %v1115_v9 }
 0x9b1   :  { %v1120_v14 = vsel %vm1119_vm8, %v2600_v63, %v1116_v13 }
 0x9b2   :  { %v1122_v52 = vmul.f32 %v1120_v14, %v3323_v27 }
 0x9b4   :  { %v1125_v18 = vmul.f32 %v2549_v10, %v1122_v52 }
 0x9b6   :  { %v3385_v20 = vadd.f32 %v2550_v15, %v1125_v18 }
 0x9b8   :  { %v1129_v53 = vpack.c.bf16 %v3385_v20, %v3383_v19 }
 0x9ba   :  { %2309 = vmatmul.msk.bf16.vlgmr.msrb.gmra.mxu3 %vm304_vm0, %v1129_v53  ;;  %2310 = vmatmul.msk.bf16.vlgmr.msra.gmra.mxu0 %vm304_vm0, %v1129_v53 }
 0xa37   :  { %v1212_v23 = vpop.f32.mrf.mxu0 }
 0xa38   :  { %v1213_v24 = vadd.f32 %v1212_v23, %v1143_v22 }
 0xa3a   :  { %v3391_v25 = vpack.c.bf16 %v1213_v24, %v1213_v24 }
 0xa3c   :  { %v1297_v12 = vsel %vm417_vm2, %v3391_v25, 0  ;;  %v1402_v18 = vunpack.c.l.b16 %v3391_v25 }
 0xa3d   :  { %v1198_v27 = vpop.f32.mrf.mxu3  ;;  %1306 = vmatpush.bf16.msrb.mxu0 %v1297_v12 }
 0xa3e   :  { %v1199_v28 = vadd.f32 %v1198_v27, %v1142_v26  ;;  %v3442_v53 = vpack.c.b16 %v1402_v18, %v1402_v18 }
 0xa3f   :  { %v1214_v38 = vpop.f32.mrf.mxu0 }
 0xa40   :  { %v1217_v29 = vpack.c.bf16 %v1199_v28, %v1199_v28  ;;  %v1215_v41 = vadd.f32 %v1214_v38, %v1143_v22 }
 0xa42   :  { %v1222_v30 = vunpack.c.l.b16 %v1217_v29  ;;  %v3412_v42 = vpack.c.bf16 %v1215_v41, %v1215_v41 }
 0xa44   :  { %v1223_v31 = vpack.c.b16 %v1222_v30, %v1222_v30  ;;  %v1316_v48 = vsel %vm417_vm2, %v3412_v42, 0 }
 0xa45   :  { %v1200_v32 = vpop.f32.mrf.mxu3 }
 0xa46   :  { %v1201_v6 = vadd.f32 %v1200_v32, %v1142_v26  ;;  %1333 = vrot.lane.b32.xlu1 %v1223_v31, %s2934_s21  ;;  %1224 = vrot.lane.b32.xlu0 %v1223_v31, %s2926_s29 }
 0xa48   :  { %v1218_v33 = vpack.c.bf16 %v1201_v6, %v1201_v6 }
 0xa4a   :  { %v1246_v34 = vunpack.c.l.b16 %v1218_v33 }
 0xa4c   :  { %v1247_v35 = vpack.c.b16 %v1246_v34, %v1246_v34 }
 0xa4e   :  { %1248 = vrot.lane.b32.xlu2 %v1247_v35, %s2926_s29  ;;  %1472 = vrot.lane.b32.xlu1 %v1247_v35, %s2936_s11 }
 0xa4f   :  { %1331 = vrot.lane.b32.xlu0 %v1223_v31, %s2935_s22 }
 0xa56   :  { %1356 = vrot.lane.b32.xlu2 %v1247_v35, %s2934_s21  ;;  %1561 = vrot.lane.b32.xlu1 %v1223_v31, %s2938_s2 }
 0xa57   :  { %1451 = vrot.lane.b32.xlu0 %v1223_v31, %s2939_s23 }
 0xa5e   :  { %1354 = vrot.lane.b32.xlu2 %v1247_v35, %s2935_s22 }
 0xa5f   :  { %1449 = vrot.lane.b32.xlu0 %v1223_v31, %s2936_s11 }
 0xa66   :  { %1474 = vrot.lane.b32.xlu2 %v1247_v35, %s2939_s23 }
 0xa67   :  { %1586 = vrot.lane.b32.xlu0 %v1247_v35, %s2937_s12 }
 0xa6e   :  { %1563 = vrot.lane.b32.xlu2 %v1223_v31, %s2937_s12 }
 0xa76   :  { %1584 = vrot.lane.b32.xlu2 %v1247_v35, %s2938_s2 }
 0xaa8   :  { %v1249_v36 = vpop.permute.xlu2 %1248 }
 0xaa9   :  { %v1254_v37 = vsel %vm345_vm1, %v1249_v36, 0 }
 0xaaa   :  { %1263 = vmatpush.bf16.xpose.msra.mxu3 %v1254_v37 }
 0xab0   :  { %v1357_v39 = vpop.permute.xlu2 %1356 }
 0xab1   :  { %v1362_v40 = vsel %vm345_vm1, %v1357_v39, 0  ;;  %2312 = vmatmul.msk.bf16.vlgmr.msra.gmra.mxu3 %vm345_vm1, %v1218_v33 }
 0xab2   :  { %1371 = vmatpush.bf16.xpose.msrb.mxu3 %v1362_v40 }
 0xab8   :  { %v1355_v43 = vpop.permute.xlu2 %1354  ;;  %v1334_v44 = vpop.permute.xlu1 %1333 }
 0xab9   :  { %v1339_v45 = vsel %vm345_vm1, %v1334_v44, 0  ;;  %v1225_v46 = vpop.permute.xlu0 %1224 }
 0xaba   :  { %v1230_v47 = vsel %vm345_vm1, %v1225_v46, 0  ;;  %1348 = vmatpush.bf16.xpose.msrb.mxu2 %v1339_v45  ;;  %v1426_v46 = vunpack.c.l.b16 %v3412_v42 }
 0xabb   :  { %1239 = vmatpush.bf16.xpose.msrb.mxu1 %v1230_v47 }
 0xabc   :  { %v1427_v47 = vpack.c.b16 %v1426_v46, %v1426_v46 }
 0xac0   :  { %v1475_v49 = vpop.permute.xlu2 %1474  ;;  %v1473_v58 = vpop.permute.xlu1 %1472 }
 0xac1   :  { %v1480_v50 = vsel %vm345_vm1, %v1475_v49, 0  ;;  %v1332_v51 = vpop.permute.xlu0 %1331  ;;  %2316 = vmatmul.msk.bf16.vlgmr.msrb.gmra.mxu3 %vm345_vm1, %v1355_v43 }
 0xac2   :  { %2311 = vmatmul.msk.bf16.vlgmr.msrb.gmra.mxu1 %vm345_vm1, %v1217_v29  ;;  %2315 = vmatmul.msk.bf16.vlgmr.msrb.gmra.mxu2 %vm345_vm1, %v1332_v51 }
 0xac3   :  { %1325 = vmatpush.bf16.msra.mxu1 %v1316_v48  ;;  %1489 = vmatpush.bf16.xpose.msra.mxu3 %v1480_v50 }
 0xac8   :  { %v1564_v54 = vpop.permute.xlu2 %1563  ;;  %v1562_v0 = vpop.permute.xlu1 %1561 }
 0xac9   :  { %v1569_v55 = vsel %vm345_vm1, %v1564_v54, 0  ;;  %v1452_v56 = vpop.permute.xlu0 %1451 }
 0xaca   :  { %v1457_v57 = vsel %vm345_vm1, %v1452_v56, 0 }
 0xacb   :  { %1466 = vmatpush.bf16.xpose.msra.mxu2 %v1457_v57 }
 0xad0   :  { %v1585_v1 = vpop.permute.xlu2 %1584 }
 0xad1   :  { %v1450_v60 = vpop.permute.xlu0 %1449  ;;  %2320 = vmatmul.msk.bf16.vlgmr.msra.gmra.mxu3 %vm345_vm1, %v1473_v58 }
 0xad2   :  { %2319 = vmatmul.msk.bf16.vlgmr.msra.gmra.mxu2 %vm345_vm1, %v1450_v60 }
 0xad3   :  { %1578 = vmatpush.bf16.xpose.msrb.mxu2 %v1569_v55 }
 0xad9   :  { %v1587_v61 = vpop.permute.xlu0 %1586 }
 0xada   :  { %v1592_v62 = vsel %vm345_vm1, %v1587_v61, 0 }
 0xadb   :  { %1601 = vmatpush.bf16.xpose.msrb.mxu3 %v1592_v62 }
 0xae2   :  { %2323 = vmatmul.msk.bf16.vlgmr.msrb.gmra.mxu2 %vm345_vm1, %v1562_v0  ;;  %2324 = vmatmul.msk.bf16.vlgmr.msrb.gmra.mxu3 %vm345_vm1, %v1585_v1 }
 0xb34   :  { %v1265_v2 = vpop.f32.mrf.mxu3 }
 0xb35   :  { %v1272_v3 = vsel %vm389_vm3, %v1265_v2, -inf }
 0xb36   :  { %1273 = vmax.xlane.f32.xlu1 %v1272_v3 }
 0xb3c   :  { %v1267_v63 = vpop.f32.mrf.mxu3 }
 0xb3f   :  { %v1241_v4 = vpop.f32.mrf.mxu1 }
 0xb40   :  { %v1269_v59 = vsel %vm389_vm3, %v1241_v4, -inf }
 0xb41   :  { %1270 = vmax.xlane.f32.xlu0 %v1269_v59 }
 0xb44   :  { %v3431_v5 = vpop.f32.mrf.mxu3 }
 0xb45   :  { %v1350_v7 = vpop.f32.mrf.mxu2  ;;  %v1380_v10 = vsel %vm389_vm3, %v3431_v5, -inf }
 0xb46   :  { %v1377_v8 = vsel %vm389_vm3, %v1350_v7, -inf }
 0xb47   :  { %v1243_v9 = vpop.f32.mrf.mxu1  ;;  %1378 = vmax.xlane.f32.xlu2 %v1377_v8 }
 0xb49   :  { %1381 = vmax.xlane.f32.xlu0 %v1380_v10 }
 0xb4c   :  { %v1375_v11 = vpop.f32.mrf.mxu3 }
 0xb4d   :  { %v1352_v13 = vpop.f32.mrf.mxu2 }
 0xb54   :  { %v3436_v14 = vpop.f32.mrf.mxu3 }
 0xb55   :  { %v1468_v15 = vpop.f32.mrf.mxu2  ;;  %v1498_v16 = vsel %vm389_vm3, %v3436_v14, -inf }
 0xb56   :  { %1499 = vmax.xlane.f32.xlu2 %v1498_v16  ;;  %v1495_v52 = vsel %vm389_vm3, %v1468_v15, -inf }
 0xb57   :  { %1496 = vmax.xlane.f32.xlu1 %v1495_v52 }
 0xb5c   :  { %v1493_v21 = vpop.f32.mrf.mxu3 }
 0xb5d   :  { %1404 = vrot.lane.b32.xlu0 %v3442_v53, %s2935_s22  ;;  %v1470_v22 = vpop.f32.mrf.mxu2 }
 0xb65   :  { %v1580_v23 = vpop.f32.mrf.mxu2  ;;  %v1603_v24 = vpop.f32.mrf.mxu3 }
 0xb66   :  { %v1610_v26 = vsel %vm389_vm3, %v1603_v24, -inf  ;;  %v1607_v28 = vsel %vm389_vm3, %v1580_v23, -inf }
 0xb67   :  { %1611 = vmax.xlane.f32.xlu1 %v1610_v26 }
 0xb6d   :  { %v1582_v12 = vpop.f32.mrf.mxu2  ;;  %v1605_v27 = vpop.f32.mrf.mxu3 }
 0xb87   :  { %1608 = vmax.xlane.f32.xlu0 %v1607_v28 }
 0xba9   :  { %v1274_v29 = vpop.xlane.xlu1 %1273 }
 0xbaa   :  { %v1276_v25 = vsub.f32 %v1265_v2, %v1274_v29 }
 0xbac   :  { %v1279_v30 = vmul.f32 1.442695, %v1276_v25 }
 0xbae   :  { %2601 = vpow2.f32 %v1279_v30 }
 0xbb4   :  { %v3448_v31 = vpop.eup %2601  ;;  %v1271_v32 = vpop.xlane.xlu0 %1270 }
 0xbb5   :  { %v1275_v6 = vsub.f32 %v1241_v4, %v1271_v32  ;;  %v1284_v33 = vsel %vm389_vm3, %v3448_v31, 0.0 }
 0xbb6   :  { %1285 = vadd.xlane.f32.xlu0 %v1284_v33 }
 0xbb7   :  { %v1277_v34 = vmul.f32 1.442695, %v1275_v6 }
 0xbb9   :  { %2603 = vpow2.f32 %v1277_v34 }
 0xbba   :  { %v1379_v35 = vpop.xlane.xlu2 %1378 }
 0xbbb   :  { %v1383_v36 = vsub.f32 %v1350_v7, %v1379_v35 }
 0xbbc   :  { %v1382_v43 = vpop.xlane.xlu0 %1381 }
 0xbbd   :  { %v1385_v37 = vmul.f32 1.442695, %v1383_v36  ;;  %v1384_v42 = vsub.f32 %v3431_v5, %v1382_v43 }
 0xbbf   :  { %v2604_v38 = vpop.eup %2603  ;;  %2605 = vpow2.f32 %v1385_v37  ;;  %v1387_v60 = vmul.f32 1.442695, %v1384_v42 }
 0xbc0   :  { %v1281_v39 = vsel %vm389_vm3, %v2604_v38, 0.0 }
 0xbc1   :  { %1282 = vadd.xlane.f32.xlu2 %v1281_v39 }
 0xbc5   :  { %v3453_v40 = vpop.eup %2605 }
 0xbc6   :  { %v1389_v41 = vsel %vm389_vm3, %v3453_v40, 0.0 }
 0xbc7   :  { %1390 = vadd.xlane.f32.xlu1 %v1389_v41 }
 0xbc9   :  { %v1500_v62 = vpop.xlane.xlu2 %1499 }
 0xbca   :  { %1519 = vrot.lane.b32.xlu0 %v3442_v53, %s2936_s11  ;;  %v1497_v48 = vpop.xlane.xlu1 %1496  ;;  %v1502_v2 = vsub.f32 %v3436_v14, %v1500_v62 }
 0xbcb   :  { %v1501_v55 = vsub.f32 %v1468_v15, %v1497_v48 }
 0xbcc   :  { %v1505_v63 = vmul.f32 1.442695, %v1502_v2 }
 0xbcd   :  { %v1503_v57 = vmul.f32 1.442695, %v1501_v55 }
 0xbcf   :  { %v1405_v44 = vpop.permute.xlu0 %1404 }
 0xbd0   :  { %v1410_v45 = vsel %vm417_vm2, %v1405_v44, 0 }
 0xbd1   :  { %1419 = vmatpush.bf16.msra.mxu0 %v1410_v45 }
 0xbd9   :  { %1540 = vrot.lane.b32.xlu2 %v1427_v47, %s2936_s11 }
 0xbda   :  { %v1612_v49 = vpop.xlane.xlu1 %1611 }
 0xbdb   :  { %v1614_v50 = vsub.f32 %v1603_v24, %v1612_v49 }
 0xbdd   :  { %v1617_v51 = vmul.f32 1.442695, %v1614_v50 }
 0xbdf   :  { %2607 = vpow2.f32 %v1617_v51 }
 0xbe0   :  { %1428 = vrot.lane.b32.xlu1 %v1427_v47, %s2935_s22  ;;  %2609 = vpow2.f32 %v1503_v57 }
 0xbe1   :  { %2611 = vpow2.f32 %v1387_v60 }
 0xbe5   :  { %v3463_v54 = vpop.eup %2607 }
 0xbe6   :  { %v1622_v56 = vsel %vm389_vm3, %v3463_v54, 0.0  ;;  %v2610_v1 = vpop.eup %2609 }
 0xbe7   :  { %v1507_v3 = vsel %vm389_vm3, %v2610_v1, 0.0  ;;  %v2612_v4 = vpop.eup %2611 }
 0xbe8   :  { %v1392_v5 = vsel %vm389_vm3, %v2612_v4, 0.0 }
 0xbf4   :  { %1623 = vadd.xlane.f32.xlu0 %v1622_v56 }
 0xbfa   :  { %v1609_v58 = vpop.xlane.xlu0 %1608 }
 0xbfb   :  { %v1613_v61 = vsub.f32 %v1580_v23, %v1609_v58 }
 0xbfd   :  { %v1615_v0 = vmul.f32 1.442695, %v1613_v61 }
 0xbff   :  { %2613 = vpow2.f32 %v1615_v0 }
 0xc00   :  { %2615 = vpow2.f32 %v1505_v63 }
 0xc02   :  { %1508 = vadd.xlane.f32.xlu2 %v1507_v3 }
 0xc05   :  { %v2614_v59 = vpop.eup %2613 }
 0xc06   :  { %v1619_v7 = vsel %vm389_vm3, %v2614_v59, 0.0  ;;  %v2616_v8 = vpop.eup %2615 }
 0xc07   :  { %v1510_v9 = vsel %vm389_vm3, %v2616_v8, 0.0 }
 0xc0a   :  { %1393 = vadd.xlane.f32.xlu2 %v1392_v5  ;;  %1620 = vadd.xlane.f32.xlu1 %v1619_v7 }
 0xc12   :  { %1511 = vadd.xlane.f32.xlu2 %v1510_v9 }
 0xc29   :  { %v1286_v10 = vpop.xlane.xlu0 %1285 }
 0xc2a   :  { %1631 = vrot.lane.b32.xlu2 %v3442_v53, %s2938_s2  ;;  %2617 = vrcp.f32 %v1286_v10  ;;  %v2469_v10 = vld [vmem:[%s3588_s6 + $0x38] sm:$0xff] }
 0xc2b   :  { %1756 = vmatpush.bf16.msra.mxu2 %v2469_v10  ;;  %v2481_v10 = vld [vmem:[%s3592_s10 + $0x78] sm:$0xff] }
 0xc30   :  { %v2618_v11 = vpop.eup %2617 }
 0xc31   :  { %v1290_v13 = vmul.f32 %v2618_v11, %v3448_v31  ;;  %v2468_v11 = vld [vmem:[%s3588_s6 + $0x30] sm:$0xff] }
 0xc32   :  { %1652 = vrot.lane.b32.xlu2 %v1427_v47, %s2938_s2  ;;  %1757 = vmatpush.bf16.msra.mxu2 %v2468_v11 }
 0xc33   :  { %v1292_v14 = vpack.c.bf16 %v1290_v13, %v1290_v13  ;;  %v2467_v13 = vld [vmem:[%s3588_s6 + $0x28] sm:$0xff] }
 0xc34   :  { %v1283_v15 = vpop.xlane.xlu2 %1282 }
 0xc35   :  { %2619 = vrcp.f32 %v1283_v15  ;;  %2314 = vmatmul.msk.bf16.vlgmr.msra.gmra.mxu1 %vm389_vm3, %v1292_v14  ;;  %v2466_v14 = vld [vmem:[%s3588_s6 + $0x20] sm:$0xff]  ;;  %s2136_s6 = sshll.u32 %s2941_s28, 4  ;;  %s2137_s6 = int_to_ptr.vmem [resolvable:$true] %s2136_s6 }
 0xc36   :  { %1758 = vmatpush.bf16.msra.mxu2 %v2467_v13  ;;  %v2480_v13 = vld [vmem:[%s3592_s10 + $0x70] sm:$0xff] }
 0xc3a   :  { %v1391_v22 = vpop.xlane.xlu1 %1390  ;;  %1759 = vmatpush.bf16.msra.mxu2 %v2466_v14 }
 0xc3b   :  { %v2620_v16 = vpop.eup %2619  ;;  %2621 = vrcp.f32 %v1391_v22 }
 0xc3c   :  { %v1289_v52 = vmul.f32 %v2620_v16, %v2604_v38  ;;  %v1520_v18 = vpop.permute.xlu0 %1519  ;;  %v1541_v12 = vpop.permute.xlu2 %1540 }
 0xc3d   :  { %v1525_v23 = vsel %vm417_vm2, %v1520_v18, 0  ;;  %v1546_v29 = vsel %vm417_vm2, %v1541_v12, 0 }
 0xc3e   :  { %v1291_v21 = vpack.c.bf16 %v1289_v52, %v1289_v52 }
 0xc40   :  { %2313 = vmatmul.msk.bf16.vlgmr.msrb.gmra.mxu0 %vm389_vm3, %v1291_v21 }
 0xc41   :  { %1534 = vmatpush.bf16.msrb.mxu0 %v1525_v23  ;;  %v2622_v53 = vpop.eup %2621 }
 0xc42   :  { %v1397_v24 = vmul.f32 %v2622_v53, %v3453_v40 }
 0xc44   :  { %v1399_v26 = vpack.c.bf16 %v1397_v24, %v1397_v24 }
 0xc50   :  { %2317 = vmatmul.msk.bf16.vlgmr.msra.gmra.mxu0 %vm389_vm3, %v1399_v26 }
 0xc52   :  { %v1429_v27 = vpop.permute.xlu1 %1428 }
 0xc53   :  { %v1434_v28 = vsel %vm417_vm2, %v1429_v27, 0 }
 0xc54   :  { %1443 = vmatpush.bf16.msrb.mxu1 %v1434_v28 }
 0xc58   :  { %1555 = vmatpush.bf16.msra.mxu1 %v1546_v29 }
 0xc67   :  { %v1624_v48 = vpop.xlane.xlu0 %1623 }
 0xc75   :  { %v1509_v25 = vpop.xlane.xlu2 %1508 }
 0xc76   :  { %2623 = vrcp.f32 %v1509_v25 }
 0xc7c   :  { %v2624_v30 = vpop.eup %2623 }
 0xc7d   :  { %v1515_v31 = vmul.f32 %v2624_v30, %v2610_v1  ;;  %v1394_v32 = vpop.xlane.xlu2 %1393  ;;  %v1621_v33 = vpop.xlane.xlu1 %1620 }
 0xc7e   :  { %2625 = vrcp.f32 %v1394_v32 }
 0xc7f   :  { %v1517_v6 = vpack.c.bf16 %v1515_v31, %v1515_v31  ;;  %2627 = vrcp.f32 %v1621_v33 }
 0xc81   :  { %2321 = vmatmul.msk.bf16.vlgmr.msrb.gmra.mxu0 %vm389_vm3, %v1517_v6 }
 0xc84   :  { %v2626_v34 = vpop.eup %2625 }
 0xc85   :  { %v1398_v35 = vmul.f32 %v2626_v34, %v2612_v4  ;;  %v1512_v36 = vpop.xlane.xlu2 %1511  ;;  %v2628_v38 = vpop.eup %2627 }
 0xc86   :  { %2629 = vrcp.f32 %v1512_v36  ;;  %v1627_v39 = vmul.f32 %v2628_v38, %v2614_v59 }
 0xc87   :  { %v1400_v37 = vpack.c.bf16 %v1398_v35, %v1398_v35  ;;  %2631 = vrcp.f32 %v1624_v48 }
 0xc88   :  { %v1629_v44 = vpack.c.bf16 %v1627_v39, %v1627_v39 }
 0xc89   :  { %2318 = vmatmul.msk.bf16.vlgmr.msrb.gmra.mxu1 %vm389_vm3, %v1400_v37  ;;  %v2551_v37 = vld [vmem:[#allocation8 + $0x1] ss:$0 sm:$0xff] }
 0xc8c   :  { %v2630_v43 = vpop.eup %2629 }
 0xc8d   :  { %v1632_v40 = vpop.permute.xlu2 %1631  ;;  %v1516_v45 = vmul.f32 %v2630_v43, %v2616_v8  ;;  %v2632_v50 = vpop.eup %2631 }
 0xc8e   :  { %v1637_v41 = vsel %vm417_vm2, %v1632_v40, 0  ;;  %v1628_v51 = vmul.f32 %v2632_v50, %v3463_v54 }
 0xc8f   :  { %1646 = vmatpush.bf16.msra.mxu0 %v1637_v41  ;;  %v1518_v49 = vpack.c.bf16 %v1516_v45, %v1516_v45 }
 0xc90   :  { %v1630_v55 = vpack.c.bf16 %v1628_v51, %v1628_v51 }
 0xc92   :  { %2325 = vmatmul.msk.bf16.vlgmr.msra.gmra.mxu0 %vm389_vm3, %v1629_v44 }
 0xc93   :  { %1976 = vmatpush.bf16.msrb.mxu0 %v2481_v10 }
 0xc95   :  { %v1653_v46 = vpop.permute.xlu2 %1652 }
 0xc96   :  { %v1658_v47 = vsel %vm417_vm2, %v1653_v46, 0  ;;  %vm1722_vm2 = vcmask 1041409  }
 0xc97   :  { %1667 = vmatpush.bf16.msrb.mxu1 %v1658_v47  ;;  %1977 = vmatpush.bf16.msrb.mxu0 %v2480_v13  ;;  %v2485_v13 = vld [vmem:[%s3598_s16 + $0x18] sm:$0xff] }
 0xc99   :  { %2322 = vmatmul.msk.bf16.vlgmr.msra.gmra.mxu1 %vm389_vm3, %v1518_v49 }
 0xc9b   :  { %2121 = vmatpush.bf16.msra.mxu1 %v2485_v13 }
 0xca9   :  { %2326 = vmatmul.msk.bf16.vlgmr.msrb.gmra.mxu1 %vm389_vm3, %v1630_v55  ;;  %vm1783_vm3 = vcmask 516096  }
 0xcb2   :  { %v1327_v56 = vpop.f32.mrf.mxu1 }
 0xcba   :  { %v1329_v57 = vpop.f32.mrf.mxu1 }
 0xcbd   :  { %v1308_v42 = vpop.f32.mrf.mxu0 }
 0xcc5   :  { %v1310_v58 = vpop.f32.mrf.mxu0 }
 0xccd   :  { %v1421_v60 = vpop.f32.mrf.mxu0 }
 0xcd5   :  { %v1423_v61 = vpop.f32.mrf.mxu0 }
 0xcfe   :  { %v1536_v62 = vpop.f32.mrf.mxu0 }
 0xd06   :  { %v1445_v0 = vpop.f32.mrf.mxu1  ;;  %v1538_v1 = vpop.f32.mrf.mxu0 }
 0xd07   :  { %v2527_v2 = vpack.i.bf16 %v1445_v0, %v1421_v60 }
 0xd09   :  { %2528 = vrot.lane.b32.xlu2 %v2527_v2, %s2937_s12  ;;  %v2472_v2 = vld [vmem:[#allocation10 + $0x30] sm:$0xff] }
 0xd0e   :  { %v1447_v3 = vpop.f32.mrf.mxu1 }
 0xd0f   :  { %v1648_v63 = vpop.f32.mrf.mxu0 }
 0xd16   :  { %v1557_v4 = vpop.f32.mrf.mxu1 }
 0xd17   :  { %v2532_v59 = vpack.i.bf16 %v1557_v4, %v1536_v62  ;;  %v1650_v54 = vpop.f32.mrf.mxu0  ;;  %v2473_v62 = vld [vmem:[#allocation10 + $0x38] sm:$0xff] }
 0xd18   :  { %1898 = vmatpush.bf16.msra.mxu3 %v2473_v62  ;;  %v2470_v54 = vld [vmem:[#allocation10 + $0x20] sm:$0xff] }
 0xd19   :  { %2533 = vrot.lane.b32.xlu1 %v2532_v59, %s2939_s23 }
 0xd1c   :  { %1899 = vmatpush.bf16.msra.mxu3 %v2472_v2 }
 0xd1e   :  { %v1559_v5 = vpop.f32.mrf.mxu1 }
 0xd26   :  { %v1669_v7 = vpop.f32.mrf.mxu1 }
 0xd27   :  { %v2537_v8 = vpack.i.bf16 %v1669_v7, %v1648_v63  ;;  %v2471_v63 = vld [vmem:[#allocation10 + $0x28] sm:$0xff] }
 0xd28   :  { %1900 = vmatpush.bf16.msra.mxu3 %v2471_v63 }
 0xd29   :  { %2538 = vrot.lane.b32.xlu0 %v2537_v8, %s2934_s21 }
 0xd2c   :  { %1901 = vmatpush.bf16.msra.mxu3 %v2470_v54 }
 0xd2e   :  { %v1671_v9 = vpop.f32.mrf.mxu1 }
 0xd63   :  { %v2529_v15 = vpop.permute.xlu2 %2528 }
 0xd64   :  { %v2531_v52 = vunpack.i.h.bf16 %v2529_v15  ;;  %v2530_v18 = vunpack.i.l.bf16 %v2529_v15 }
 0xd66   :  { %v1698_v53 = vsel %vm345_vm1, %v1327_v56, %v2531_v52  ;;  %v1697_v24 = vsel %vm345_vm1, %v1308_v42, %v2530_v18  ;;  %vm1779_vm1 = vcmask 523271  }
 0xd8b   :  { %v2534_v16 = vpop.permute.xlu1 %2533 }
 0xd8c   :  { %v2536_v21 = vunpack.i.h.bf16 %v2534_v16  ;;  %v2535_v22 = vunpack.i.l.bf16 %v2534_v16 }
 0xd8e   :  { %v1700_v27 = vsel %vm821_vm4, %v1698_v53, %v2536_v21  ;;  %v1699_v28 = vsel %vm821_vm4, %v1697_v24, %v2535_v22  ;;  %v2479_v21 = vld [vmem:[%s3592_s10 + $0x68] sm:$0xff]  ;;  %v2552_v22 = vld [vmem:[#allocation14 + $0x1] ss:$0 sm:$0xff] }
 0xd8f   :  { %1978 = vmatpush.bf16.msrb.mxu0 %v2479_v21 }
 0xd9b   :  { %v2539_v23 = vpop.permute.xlu0 %2538 }
 0xd9c   :  { %v2541_v26 = vunpack.i.h.bf16 %v2539_v23  ;;  %v2540_v12 = vunpack.i.l.bf16 %v2539_v23 }
 0xd9e   :  { %v1702_v29 = vsel %vm824_vm5, %v1700_v27, %v2541_v26  ;;  %v1701_v25 = vsel %vm824_vm5, %v1699_v28, %v2540_v12  ;;  %v2478_v12 = vld [vmem:[%s3592_s10 + $0x60] sm:$0xff]  ;;  %v2553_v27 = vld [vmem:[#allocation16 + $0x1] ss:$0 sm:$0xff] }
 0xd9f   :  { %v1704_v30 = vpack.c.bf16 %v1702_v29, %v1702_v29  ;;  %v1703_v31 = vpack.c.bf16 %v1701_v25, %v1701_v25  ;;  %1979 = vmatpush.bf16.msrb.mxu0 %v2478_v12 }
 0xda1   :  { %v1719_v32 = vunpack.c.l.b16 %v1704_v30  ;;  %v1718_v6 = vunpack.c.l.b16 %v1703_v31  ;;  %v2477_v30 = vld [vmem:[%s3592_s10 + $0x58] sm:$0xff] }
 0xda3   :  { %v1721_v33 = vrot.slane %v1719_v32, 6  ;;  %v1720_v34 = vrot.slane %v1718_v6, 7  ;;  %1980 = vmatpush.bf16.msrb.mxu0 %v2477_v30 }
 0xda5   :  { %v1723_v35 = vsel %vm1722_vm2, %v1721_v33, %v1720_v34  ;;  %v2476_v33 = vld [vmem:[%s3592_s10 + $0x50] sm:$0xff] }
 0xda6   :  { %v1724_v36 = vpack.c.b16 %v1723_v35, %v1723_v35 }
 0xda7   :  { %1981 = vmatpush.bf16.msrb.mxu0 %v2476_v33  ;;  %v2556_v33 = vld [vmem:[#allocation17 + $0x1] ss:$0 sm:$0xff] }
 0xda8   :  { %2351 = vmatmul.msk.bf16.vlgmr.msra.gmra.mxu2 %vm304_vm0, %v1724_v36 }
 0xe2b   :  { %v1761_v38 = vpop.f32.mrf.mxu2 }
 0xe2c   :  { %v1762_v39 = vadd.f32 %v2551_v37, %v1761_v38 }
 0xe2e   :  { %v1766_v40 = vrot.slane %v1762_v39, 1  ;;  %v1767_v41 = vrot.slane %v1762_v39, 2 }
 0xe30   :  { %v1770_v43 = vadd.f32 %v1766_v40, %v3383_v19  ;;  %v1771_v44 = vadd.f32 %v1767_v41, %v3385_v20 }
 0xe32   :  { %v1780_v45 = vsel %vm1779_vm1, %v1770_v43, 0.0  ;;  %v1776_v46 = vrot.slane %v1771_v44, 7 }
 0xe33   :  { %v1763_v47 = vpop.f32.mrf.mxu2  ;;  %1781 = vadd.xlane.f32.xlu0 %v1780_v45  ;;  %v2475_v45 = vld [vmem:[%s3592_s10 + $0x48] sm:$0xff] }
 0xe34   :  { %v1784_v48 = vsel %vm1783_vm3, %v1776_v46, 0.0  ;;  %1982 = vmatpush.bf16.msrb.mxu0 %v2475_v45  ;;  %v2474_v46 = vld [vmem:[%s3592_s10 + $0x40] sm:$0xff]  ;;  %v2554_v47 = vld [vmem:[#allocation11 + $0x1] ss:$0 sm:$0xff] }
 0xe35   :  { %1785 = vadd.xlane.f32.xlu2 %v1784_v48 }
 0xe38   :  { %1983 = vmatpush.bf16.msrb.mxu0 %v2474_v46 }
 0xea6   :  { %v1782_v49 = vpop.xlane.xlu0 %1781 }
 0xea7   :  { %v1787_v50 = vmul.f32 %v1782_v49, %v3281_v17 }
 0xea8   :  { %v1786_v51 = vpop.xlane.xlu2 %1785 }
 0xea9   :  { %v1794_v55 = vsub.f32 %v1770_v43, %v1787_v50  ;;  %v1788_v56 = vmul.f32 %v1786_v51, %v3281_v17 }
 0xeab   :  { %v1791_v57 = vrot.slane %v1788_v56, 1  ;;  %v1796_v19 = vmul.f32 %v1794_v55, %v1794_v55  ;;  %v2555_v56 = vld [vmem:[#allocation13 + $0x1] ss:$0 sm:$0xff] }
 0xead   :  { %v1795_v42 = vsub.f32 %v1771_v44, %v1791_v57  ;;  %v1803_v20 = vsel %vm1779_vm1, %v1796_v19, 0.0 }
 0xeae   :  { %1804 = vadd.xlane.f32.xlu2 %v1803_v20 }
 0xeaf   :  { %v1797_v58 = vmul.f32 %v1795_v42, %v1795_v42 }
 0xeb1   :  { %v1800_v60 = vrot.slane %v1797_v58, 7 }
 0xeb3   :  { %v1806_v61 = vsel %vm1783_vm3, %v1800_v60, 0.0 }
 0xeb4   :  { %1807 = vadd.xlane.f32.xlu1 %v1806_v61 }
 0xf21   :  { %v1805_v0 = vpop.xlane.xlu2 %1804 }
 0xf22   :  { %v1809_v1 = vmul.f32 %v1805_v0, %v3281_v17 }
 0xf24   :  { %v1811_v3 = vadd.f32 1e-05, %v1809_v1 }
 0xf26   :  { %2633 = vrsqrt.f32 %v1811_v3  ;;  %vm1819_vm5 = vweird.f32 %v1811_v3 }
 0xf27   :  { %v1808_v4 = vpop.xlane.xlu1 %1807 }
 0xf28   :  { %v1810_v59 = vmul.f32 %v1808_v4, %v3281_v17 }
 0xf2a   :  { %v1812_v5 = vadd.f32 1e-05, %v1810_v59 }
 0xf2c   :  { %v2634_v7 = vpop.eup %2633  ;;  %2635 = vrsqrt.f32 %v1812_v5  ;;  %vm1829_vm11 = vweird.f32 %v1812_v5 }
 0xf2d   :  { %v1814_v8 = vmul.f32 %v2634_v7, %v1811_v3  ;;  %vm1820_vm4 = vweird.f32 %v2634_v7 }
 0xf2e   :  { %vm1821_vm9 = vmor %vm1819_vm5, %vm1820_vm4 }
 0xf2f   :  { %v1815_v9 = vmul.f32 %v2634_v7, %v1814_v8 }
 0xf31   :  { %v1816_v11 = vmul.f32 0.5, %v1815_v9 }
 0xf32   :  { %v2636_v14 = vpop.eup %2635 }
 0xf33   :  { %v1817_v15 = vsub.f32 1.5, %v1816_v11  ;;  %v1824_v16 = vmul.f32 %v2636_v14, %v1812_v5  ;;  %vm1830_vm10 = vweird.f32 %v2636_v14 }
 0xf34   :  { %vm1831_vm12 = vmor %vm1829_vm11, %vm1830_vm10 }
 0xf35   :  { %v1818_v52 = vmul.f32 %v2634_v7, %v1817_v15  ;;  %v1825_v18 = vmul.f32 %v2636_v14, %v1824_v16 }
 0xf37   :  { %v1822_v23 = vsel %vm1821_vm9, %v2634_v7, %v1818_v52  ;;  %v1826_v53 = vmul.f32 0.5, %v1825_v18  ;;  %v2483_v52 = vld [vmem:[%s3598_s16 + $0x8] sm:$0xff] }
 0xf38   :  { %v1838_v24 = vmul.f32 %v1822_v23, %v1794_v55  ;;  %v2482_v23 = vld [vmem:[%s3598_s16] sm:$0xff] }
 0xf39   :  { %v1827_v26 = vsub.f32 1.5, %v1826_v53 }
 0xf3a   :  { %v1841_v28 = vmul.f32 %v2552_v22, %v1838_v24 }
 0xf3b   :  { %v1828_v29 = vmul.f32 %v2636_v14, %v1827_v26 }
 0xf3c   :  { %v1844_v31 = vadd.f32 %v2553_v27, %v1841_v28 }
 0xf3d   :  { %v1832_v25 = vsel %vm1831_vm12, %v2636_v14, %v1828_v29  ;;  %v2484_v14 = vld [vmem:[%s3598_s16 + $0x10] sm:$0xff] }
 0xf3e   :  { %v1835_v32 = vrot.slane %v1832_v25, 1  ;;  %v1846_v34 = vpack.c.bf16 %v1844_v31, %v1844_v31  ;;  %2122 = vmatpush.bf16.msra.mxu1 %v2484_v14 }
 0xf40   :  { %v1839_v6 = vmul.f32 %v1835_v32, %v1795_v42  ;;  %v1861_v37 = vunpack.c.l.b16 %v1846_v34 }
 0xf42   :  { %v1842_v35 = vmul.f32 %v2552_v22, %v1839_v6  ;;  %v1863_v40 = vrot.slane %v1861_v37, 7  ;;  %2123 = vmatpush.bf16.msra.mxu1 %v2483_v52 }
 0xf44   :  { %v1845_v36 = vadd.f32 %v2553_v27, %v1842_v35 }
 0xf46   :  { %v1847_v38 = vpack.c.bf16 %v1845_v36, %v1845_v36  ;;  %2124 = vmatpush.bf16.msra.mxu1 %v2482_v23 }
 0xf48   :  { %v1862_v39 = vunpack.c.l.b16 %v1847_v38 }
 0xf4a   :  { %v1864_v41 = vrot.slane %v1862_v39, 6 }
 0xf4c   :  { %v1865_v43 = vsel %vm1722_vm2, %v1864_v41, %v1863_v40 }
 0xf4d   :  { %v1866_v44 = vpack.c.b16 %v1865_v43, %v1865_v43 }
 0xf4f   :  { %2368 = vmatmul.msk.bf16.vlgmr.msra.gmra.mxu3 %vm304_vm0, %v1866_v44 }
 0xfd2   :  { %v1903_v48 = vpop.f32.mrf.mxu3 }
 0xfd3   :  { %v1904_v49 = vadd.f32 %v2554_v47, %v1903_v48 }
 0xfd5   :  { %v1907_v50 = vmax.f32 %v1904_v49, 0.0 }
 0xfd7   :  { %v1908_v51 = vpack.c.bf16 %v1907_v50, %v1907_v50 }
 0xfd9   :  { %1984 = vmatmul.bf16.vlgmr.msrb.gmra.mxu0 %v1908_v51 }
 0xfda   :  { %v1905_v55 = vpop.f32.mrf.mxu3 }
0x1056   :  { %v1985_v57 = vpop.f32.mrf.mxu0 }
0x1057   :  { %v1986_v19 = vadd.f32 %v2555_v56, %v1985_v57  ;;  %v2558_v56 = vld [vmem:[%s3599_s17] ss:$0 sm:$0xff] }
0x1059   :  { %v1991_v42 = vrot.slane %v1986_v19, 2  ;;  %v1990_v61 = vrot.slane %v1986_v19, 1 }
0x105b   :  { %v1995_v20 = vadd.f32 %v1991_v42, %v1845_v36  ;;  %v1994_v0 = vadd.f32 %v1990_v61, %v1844_v31  ;;  %v2557_v36 = vld [vmem:[%s3597_s15 + $0x1] ss:$0 sm:$0xff] }
0x105d   :  { %v2000_v58 = vrot.slane %v1995_v20, 7  ;;  %v2003_v1 = vsel %vm1779_vm1, %v1994_v0, 0.0 }
0x105e   :  { %v1987_v60 = vpop.f32.mrf.mxu0 }
0x105f   :  { %v2006_v62 = vsel %vm1783_vm3, %v2000_v58, 0.0 }
0x1060   :  { %2007 = vadd.xlane.f32.xlu2 %v2006_v62 }
0x1068   :  { %2004 = vadd.xlane.f32.xlu2 %v2003_v1 }
0x10d3   :  { %v2008_v2 = vpop.xlane.xlu2 %2007 }
0x10d4   :  { %v2010_v3 = vmul.f32 %v2008_v2, %v3281_v17 }
0x10d6   :  { %v2013_v63 = vrot.slane %v2010_v3, 1 }
0x10d8   :  { %v2017_v4 = vsub.f32 %v1995_v20, %v2013_v63 }
0x10da   :  { %v2019_v59 = vmul.f32 %v2017_v4, %v2017_v4 }
0x10db   :  { %v2005_v54 = vpop.xlane.xlu2 %2004 }
0x10dc   :  { %v2009_v5 = vmul.f32 %v2005_v54, %v3281_v17  ;;  %v2022_v7 = vrot.slane %v2019_v59, 7 }
0x10de   :  { %v2016_v8 = vsub.f32 %v1994_v0, %v2009_v5  ;;  %v2028_v9 = vsel %vm1783_vm3, %v2022_v7, 0.0 }
0x10df   :  { %2029 = vadd.xlane.f32.xlu0 %v2028_v9 }
0x10e0   :  { %v2018_v10 = vmul.f32 %v2016_v8, %v2016_v8 }
0x10e2   :  { %v2025_v11 = vsel %vm1779_vm1, %v2018_v10, 0.0 }
0x10e3   :  { %2026 = vadd.xlane.f32.xlu1 %v2025_v11 }
0x1152   :  { %v2030_v15 = vpop.xlane.xlu0 %2029 }
0x1153   :  { %v2032_v16 = vmul.f32 %v2030_v15, %v3281_v17 }
0x1155   :  { %v2034_v18 = vadd.f32 1e-05, %v2032_v16 }
0x1156   :  { %v2027_v21 = vpop.xlane.xlu1 %2026 }
0x1157   :  { %2637 = vrsqrt.f32 %v2034_v18  ;;  %v2031_v22 = vmul.f32 %v2027_v21, %v3281_v17  ;;  %vm2051_vm14 = vweird.f32 %v2034_v18 }
0x1159   :  { %v2033_v53 = vadd.f32 1e-05, %v2031_v22 }
0x115b   :  { %2639 = vrsqrt.f32 %v2033_v53  ;;  %vm2041_vm7 = vweird.f32 %v2033_v53 }
0x115d   :  { %v2638_v24 = vpop.eup %2637 }
0x115e   :  { %v2046_v26 = vmul.f32 %v2638_v24, %v2034_v18  ;;  %vm2052_vm13 = vweird.f32 %v2638_v24 }
0x115f   :  { %vm2053_vm15 = vmor %vm2051_vm14, %vm2052_vm13 }
0x1160   :  { %v2047_v12 = vmul.f32 %v2638_v24, %v2046_v26 }
0x1161   :  { %v2640_v27 = vpop.eup %2639 }
0x1162   :  { %v2048_v28 = vmul.f32 0.5, %v2047_v12  ;;  %v2036_v29 = vmul.f32 %v2640_v27, %v2033_v53  ;;  %vm2042_vm6 = vweird.f32 %v2640_v27 }
0x1163   :  { %vm2043_vm8 = vmor %vm2041_vm7, %vm2042_vm6 }
0x1164   :  { %v2049_v25 = vsub.f32 1.5, %v2048_v28  ;;  %v2037_v30 = vmul.f32 %v2640_v27, %v2036_v29 }
0x1166   :  { %v2050_v31 = vmul.f32 %v2638_v24, %v2049_v25  ;;  %v2038_v32 = vmul.f32 0.5, %v2037_v30 }
0x1168   :  { %v2054_v17 = vsel %vm2053_vm15, %v2638_v24, %v2050_v31  ;;  %v2039_v6 = vsub.f32 1.5, %v2038_v32 }
0x1169   :  { %v2057_v34 = vrot.slane %v2054_v17, 1 }
0x116a   :  { %v2040_v35 = vmul.f32 %v2640_v27, %v2039_v6 }
0x116b   :  { %v2061_v37 = vmul.f32 %v2057_v34, %v2017_v4 }
0x116c   :  { %v2044_v38 = vsel %vm2043_vm8, %v2640_v27, %v2040_v35 }
0x116d   :  { %v2064_v39 = vmul.f32 %v2556_v33, %v2061_v37  ;;  %v2060_v40 = vmul.f32 %v2044_v38, %v2016_v8 }
0x116f   :  { %v2067_v41 = vadd.f32 %v2557_v36, %v2064_v39  ;;  %v2063_v43 = vmul.f32 %v2556_v33, %v2060_v40 }
0x1171   :  { %v2069_v44 = vpack.c.bf16 %v2067_v41, %v2067_v41  ;;  %v2066_v45 = vadd.f32 %v2557_v36, %v2063_v43 }
0x1173   :  { %v2085_v46 = vunpack.c.l.b16 %v2069_v44  ;;  %v2068_v47 = vpack.c.bf16 %v2066_v45, %v2066_v45 }
0x1175   :  { %v2084_v48 = vunpack.c.l.b16 %v2068_v47  ;;  %v2087_v49 = vrot.slane %v2085_v46, 6 }
0x1177   :  { %v2086_v50 = vrot.slane %v2084_v48, 7 }
0x1179   :  { %v2088_v51 = vsel %vm1722_vm2, %v2087_v49, %v2086_v50 }
0x117a   :  { %v2089_v55 = vpack.c.b16 %v2088_v51, %v2088_v51 }
0x117c   :  { %2433 = vmatmul.msk.bf16.vlgmr.msra.gmra.mxu1 %vm304_vm0, %v2089_v55 }
0x11f9   :  { %v2126_v57 = vpop.f32.mrf.mxu1 }
0x11fa   :  { %v2127_v19 = vadd.f32 %v2558_v56, %v2126_v57 }
0x11fc   :  { %2130 = vst [vmem:[#allocation19] sm:$0x3] %v2127_v19 }
0x11fd   :  { %2141 = dma.vmem_to_hbm [thread:$0]  %s2137_s6, 32, %s2139_s5, [#allocation4]  }
0x1201   :  { %v2128_v42 = vpop.f32.mrf.mxu1 }
0x1202   :  { %2917 = dma.done.wait [#allocation4], 32  }
0x1203   :  { %2918 = vsyncadd [#allocation4], 4294967264 }
0x1204   :  { %2146 = vsyncpa [#allocation3], 1 }
0x1205   :  { %2147 = vsyncpa [#allocation6], 1 }
0x1206   :  { %2148 = vsyncpa [#allocation9], 1 }
0x1207   :  { %2149 = vsyncpa [#allocation12], 1 }
0x1208   :  { %2150 = vsyncpa [#allocation15], 1 }
0x1209   :  { %2151 = vsyncpa [#allocation18], 1 }
0x120a   :  { %2152 = vsyncpa [#allocation4], 1 }

</bundles_post_ra>
